<compile_context>
chip_gen: v7x
topology: tpu7x:2x2x1
jax: 0.10.0
libtpu: 0.0.40
codegen_flags: <defaults>
</compile_context>

<pallas_src>
import functools

import jax
import jax.numpy as jnp
import numpy as np
from jax.experimental import pallas as pl
from jax.experimental.pallas import tpu as pltpu


# -----------------------------------------------------------------------------
# Pallas kernel: one (batch, group) step of depthwise conv + bias, then q * (.)
# -----------------------------------------------------------------------------
def _crpe_kernel(q_ref, v_ref, w_ref, b_ref, o_ref, *, H, Cg, WC, ks, p_max):
    """Blocks:
      q_ref: (1, 1, H, WC)            lane-dense q slab  (WC = W * Cg)
      v_ref: (1, 1, H + 2*p_max, WC)  vertically zero-padded v slab
      w_ref: (G, KKm, WC)             per-tap weights, tiled over W and
                                      pre-multiplied by the horizontal
                                      validity mask (grid-resident)
      b_ref: (G, 1, WC)               lane-tiled bias (grid-resident)
      o_ref: (1, 1, H, WC)
    """
    g = pl.program_id(1)
    qv = q_ref[0, 0].astype(jnp.float32)                        # (H, WC)

    # Unroll one statically-sized conv per window group, gated on runtime g.
    for gi, k in enumerate(ks):

        @pl.when(g == gi)
        def _(gi=gi, k=k):
            p = k // 2
            base = p_max - p
            acc = jnp.broadcast_to(b_ref[gi], (H, WC)).astype(jnp.float32)
            for dy in range(k):
                # Vertical tap: static sublane slice of the pre-padded slab,
                # hoisted out of the dx loop (k slices total, not k*k).
                xv = v_ref[0, 0, base + dy:base + dy + H, :].astype(jnp.float32)
                for dx in range(k):
                    ox = dx - p
                    if ox == 0:
                        xs = xv
                    else:
                        # Horizontal tap: XLU lane rotation; wrapped lanes are
                        # zeroed by the mask folded into w_ref.
                        xs = pltpu.roll(xv, shift=(-ox * Cg) % WC, axis=1)
                    wt = w_ref[gi, dy * k + dx:dy * k + dx + 1, :]   # (1, WC)
                    acc = acc + xs * wt
            # EV_hat = q * (depthwise conv(v) + bias)
            o_ref[0, 0] = (qv * acc).astype(o_ref.dtype)


# -----------------------------------------------------------------------------
# Module wrapper: layout packing + single fused pallas_call
# -----------------------------------------------------------------------------
def conv_rel_pos_enc(q, v, size, window, params):
    """ConvRelPosEncs.forward.

    q, v: (B, h, N, Ch); size = (H, W); window: int or dict {k: head_split}
    (params must follow window.items() order, like the PyTorch ModuleList);
    params: list of (weight (Cg,1,k,k), bias (Cg,)) per window group.
    Returns EV_hat of shape (B, h, N, Ch).
    """
    B, h, N, Ch = q.shape
    H, W = size
    assert N == H * W
    if isinstance(window, int):
        window = {window: h}
    ks = tuple(window.keys())
    splits = tuple(window.values())
    assert sum(splits) == h and len(params) == len(ks)
    G = len(ks)
    Cg_list = [s * Ch for s in splits]
    Cgm = max(Cg_list)
    WC = W * Cgm
    KKm = max(k * k for k in ks)
    p_max = max(k // 2 for k in ks)
    Hp = H + 2 * p_max
    uniform = len(set(splits)) == 1

    # ---- pack q, v into lane-dense (B, G, H, W*Cgm) slabs -------------------
    if uniform:
        hg = splits[0]

        def pack(t):
            t = t.reshape(B, G, hg, H, W, Ch).transpose(0, 1, 3, 4, 2, 5)
            return t.reshape(B, G, H, WC)

        q_l, v_l = pack(q), pack(v)
    else:
        q_sl, v_sl = [], []
        h0 = 0
        for hg in splits:
            Cg = hg * Ch

            def grp(t, h0=h0, hg=hg, Cg=Cg):
                x = t[:, h0:h0 + hg].reshape(B, hg, H, W, Ch)
                x = x.transpose(0, 2, 3, 1, 4).reshape(B, H, W, Cg)
                if Cg < Cgm:
                    x = jnp.pad(x, ((0, 0), (0, 0), (0, 0), (0, Cgm - Cg)))
                return x.reshape(B, H, WC)

            q_sl.append(grp(q))
            v_sl.append(grp(v))
            h0 += hg
        q_l = jnp.stack(q_sl, axis=1)
        v_l = jnp.stack(v_sl, axis=1)

    # Vertical halo (zero rows) so the kernel needs no padded VMEM scratch.
    v_l = jnp.pad(v_l, ((0, 0), (0, 0), (p_max, p_max), (0, 0)))

    # ---- pack weights / bias: lane-tiled, horizontal mask folded in ---------
    x_idx = jnp.arange(W)
    w_rows, b_rows = [], []
    for (k, hg), (wg, bg) in zip(window.items(), params):
        Cg = hg * Ch
        p = k // 2
        wk = wg.reshape(Cg, k * k).T.astype(jnp.float32)          # (k*k, Cg)
        dx_off = (jnp.arange(k * k) % k) - p                      # (k*k,)
        xo = x_idx[None, :] + dx_off[:, None]                     # (k*k, W)
        valid = ((xo >= 0) & (xo < W)).astype(jnp.float32)
        w_tile = wk[:, None, :] * valid[:, :, None]               # (k*k, W, Cg)
        if Cg < Cgm:
            w_tile = jnp.pad(w_tile, ((0, 0), (0, 0), (0, Cgm - Cg)))
        w_lane = w_tile.reshape(k * k, WC)
        if k * k < KKm:
            w_lane = jnp.pad(w_lane, ((0, KKm - k * k), (0, 0)))
        w_rows.append(w_lane)
        bgp = bg.astype(jnp.float32)
        if Cg < Cgm:
            bgp = jnp.pad(bgp, (0, Cgm - Cg))
        b_rows.append(jnp.tile(bgp, W)[None, :])                  # (1, WC)
    w_l = jnp.stack(w_rows, axis=0)                               # (G, KKm, WC)
    b_l = jnp.stack(b_rows, axis=0)                               # (G, 1, WC)

    # ---- single fused pallas_call over (batch, group) -----------------------
    kernel = functools.partial(_crpe_kernel, H=H, Cg=Cgm, WC=WC, ks=ks,
                               p_max=p_max)
    out_l = pl.pallas_call(
        kernel,
        out_shape=jax.ShapeDtypeStruct((B, G, H, WC), q.dtype),
        grid_spec=pltpu.PrefetchScalarGridSpec(
            num_scalar_prefetch=0,
            grid=(B, G),
            in_specs=[
                pl.BlockSpec((1, 1, H, WC), lambda b, g: (b, g, 0, 0)),   # q
                pl.BlockSpec((1, 1, Hp, WC), lambda b, g: (b, g, 0, 0)),  # v (padded)
                pl.BlockSpec((G, KKm, WC), lambda b, g: (0, 0, 0)),       # weights
                pl.BlockSpec((G, 1, WC), lambda b, g: (0, 0, 0)),         # bias
            ],
            out_specs=pl.BlockSpec((1, 1, H, WC), lambda b, g: (b, g, 0, 0)),
        ),
        compiler_params=pltpu.CompilerParams(
            dimension_semantics=("parallel", "arbitrary")),
        # TODO(synk): at real ViT resolutions (H,W >= 56, Cg in the hundreds),
        # tile H with a 2*(k//2)-row halo and set vmem_limit_bytes so blocks
        # fit v7x's 64 MiB VMEM; full-image blocks are fine at this toy size.
    )(q_l, v_l, w_l, b_l)

    # ---- unpack back to (B, h, N, Ch) ---------------------------------------
    if uniform:
        hg = splits[0]
        out = (out_l.reshape(B, G, H, W, hg, Ch)
                    .transpose(0, 1, 4, 2, 3, 5)
                    .reshape(B, h, N, Ch))
    else:
        outs = []
        for gi, hg in enumerate(splits):
            Cg = hg * Ch
            og = out_l[:, gi].reshape(B, H, W, Cgm)[..., :Cg]
            og = og.reshape(B, H, W, hg, Ch).transpose(0, 3, 1, 2, 4)
            outs.append(og.reshape(B, hg, N, Ch))
        out = jnp.concatenate(outs, axis=1)
    return out


# -----------------------------------------------------------------------------
# Pure-JAX reference (mirrors the PyTorch NCHW path exactly), for verification
# -----------------------------------------------------------------------------
def conv_rel_pos_enc_ref(q, v, size, window, params):
    B, h, N, Ch = q.shape
    H, W = size
    v_img = v.reshape(B, h, H, W, Ch).transpose(0, 1, 4, 2, 3).reshape(B, h * Ch, H, W)
    outs, c0 = [], 0
    for (k, hg), (wg, bg) in zip(window.items(), params):
        Cg = hg * Ch
        x = v_img[:, c0:c0 + Cg]
        p = k // 2
        y = jax.lax.conv_general_dilated(
            x, wg, window_strides=(1, 1), padding=[(p, p), (p, p)],
            feature_group_count=Cg, dimension_numbers=("NCHW", "OIHW", "NCHW"))
        outs.append(y + bg[None, :, None, None])
        c0 += Cg
    conv_v = jnp.concatenate(outs, axis=1)
    conv_v = conv_v.reshape(B, h, Ch, H, W).transpose(0, 1, 3, 4, 2).reshape(B, h, N, Ch)
    return q * conv_v


# -----------------------------------------------------------------------------
if __name__ == "__main__":
    # Module config: Ch=8 channels/head, h=4 heads, window={3:2, 5:2}
    Ch, h = 8, 4
    window = {3: 2, 5: 2}           # kernel size -> #heads using it
    B, H, W = 2, 16, 16
    N = H * W

    key = jax.random.PRNGKey(0)
    kq, kv, kp = jax.random.split(key, 3)
    q = jax.random.normal(kq, (B, h, N, Ch), dtype=jnp.float32)
    v = jax.random.normal(kv, (B, h, N, Ch), dtype=jnp.float32)

    # Deterministic depthwise Conv2d params per window group:
    # weight shape (Cg, 1, k, k), bias shape (Cg,)   (Cg = head_split * Ch)
    params = []
    for i, (k, hg) in enumerate(window.items()):
        Cg = hg * Ch
        kw, kb = jax.random.split(jax.random.fold_in(kp, i))
        wg = jax.random.normal(kw, (Cg, 1, k, k), dtype=jnp.float32) / np.sqrt(k * k)
        bg = jax.random.normal(kb, (Cg,), dtype=jnp.float32) * 0.1
        params.append((wg, bg))

    fwd = jax.jit(lambda q_, v_, p_: conv_rel_pos_enc(q_, v_, (H, W), window, p_))
    out = jax.block_until_ready(fwd(q, v, params))

    ref = conv_rel_pos_enc_ref(q, v, (H, W), window, params)
    np.testing.assert_allclose(np.asarray(out), np.asarray(ref), rtol=1e-4, atol=1e-5)
    assert out.shape == (B, h, N, Ch)

    print("KERNEL_OK")
</pallas_src>

<mosaic_0001>
module attributes {stable_mosaic.version = 11 : i64} {
  func.func @_crpe_kernel(%arg0: i32, %arg1: i32, %arg2: memref<1x1x16x256xf32, #tpu.memory_space<vmem>>, %arg3: memref<1x1x20x256xf32, #tpu.memory_space<vmem>>, %arg4: memref<2x25x256xf32, #tpu.memory_space<vmem>>, %arg5: memref<2x1x256xf32, #tpu.memory_space<vmem>>, %arg6: memref<1x1x16x256xf32, #tpu.memory_space<vmem>>) attributes {dimension_semantics = [#tpu.dimension_semantics<parallel>, #tpu.dimension_semantics<arbitrary>], iteration_bounds = array<i64: 2, 2>, scalar_prefetch = 0 : i64, scratch_operands = 0 : i64, tpu.core_type = #tpu.core_type<tc>, window_params = [{transform_indices = @transform_0, window_bounds = array<i64: 1, 1, 16, 256>}, {transform_indices = @transform_1, window_bounds = array<i64: 1, 1, 20, 256>}, {pipeline_mode = #tpu.pipeline_mode<synchronous>, transform_indices = @transform_2, window_bounds = array<i64: 2, 25, 256>}, {pipeline_mode = #tpu.pipeline_mode<synchronous>, transform_indices = @transform_3, window_bounds = array<i64: 2, 1, 256>}, {transform_indices = @transform_4, window_bounds = array<i64: 1, 1, 16, 256>}]} {
    %c0 = arith.constant 0 : index
    %c0_0 = arith.constant 0 : index
    %c0_1 = arith.constant 0 : index
    %c0_2 = arith.constant 0 : index
    %0 = vector.load %arg2[%c0, %c0_0, %c0_1, %c0_2] : memref<1x1x16x256xf32, #tpu.memory_space<vmem>>, vector<1x1x16x256xf32>
    %1 = vector.shape_cast %0 : vector<1x1x16x256xf32> to vector<16x256xf32>
    %c0_i32 = arith.constant 0 : i32
    %2 = arith.cmpi eq, %arg1, %c0_i32 : i32
    %3 = arith.extui %2 : i1 to i32
    %c0_i32_3 = arith.constant 0 : i32
    %4 = arith.cmpi ne, %3, %c0_i32_3 : i32
    scf.if %4 {
      %c0_5 = arith.constant 0 : index
      %c0_6 = arith.constant 0 : index
      %c0_7 = arith.constant 0 : index
      %8 = vector.load %arg5[%c0_5, %c0_6, %c0_7] : memref<2x1x256xf32, #tpu.memory_space<vmem>>, vector<1x1x256xf32>
      %9 = vector.shape_cast %8 : vector<1x1x256xf32> to vector<1x256xf32>
      %10 = vector.shape_cast %9 : vector<1x256xf32> to vector<1x256xf32>
      %11 = vector.broadcast %10 : vector<1x256xf32> to vector<16x256xf32>
      %c0_8 = arith.constant 0 : index
      %c0_9 = arith.constant 0 : index
      %c1 = arith.constant 1 : index
      %c0_10 = arith.constant 0 : index
      %12 = vector.load %arg3[%c0_8, %c0_9, %c1, %c0_10] : memref<1x1x20x256xf32, #tpu.memory_space<vmem>>, vector<1x1x16x256xf32>
      %13 = vector.shape_cast %12 : vector<1x1x16x256xf32> to vector<16x256xf32>
      %c16_i32 = arith.constant 16 : i32
      %14 = tpu.dynamic_rotate %13 by %c16_i32 dim 1 : vector<16x256xf32>, i32 -> vector<16x256xf32>
      %c0_11 = arith.constant 0 : index
      %c0_12 = arith.constant 0 : index
      %c0_13 = arith.constant 0 : index
      %15 = vector.load %arg4[%c0_11, %c0_12, %c0_13] : memref<2x25x256xf32, #tpu.memory_space<vmem>>, vector<1x1x256xf32>
      %16 = vector.shape_cast %15 : vector<1x1x256xf32> to vector<1x256xf32>
      %17 = vector.broadcast %16 : vector<1x256xf32> to vector<16x256xf32>
      %18 = arith.mulf %14, %17 : vector<16x256xf32>
      %19 = arith.addf %11, %18 : vector<16x256xf32>
      %c0_14 = arith.constant 0 : index
      %c1_15 = arith.constant 1 : index
      %c0_16 = arith.constant 0 : index
      %20 = vector.load %arg4[%c0_14, %c1_15, %c0_16] : memref<2x25x256xf32, #tpu.memory_space<vmem>>, vector<1x1x256xf32>
      %21 = vector.shape_cast %20 : vector<1x1x256xf32> to vector<1x256xf32>
      %22 = vector.broadcast %21 : vector<1x256xf32> to vector<16x256xf32>
      %23 = arith.mulf %13, %22 : vector<16x256xf32>
      %24 = arith.addf %19, %23 : vector<16x256xf32>
      %c240_i32 = arith.constant 240 : i32
      %25 = tpu.dynamic_rotate %13 by %c240_i32 dim 1 : vector<16x256xf32>, i32 -> vector<16x256xf32>
      %c0_17 = arith.constant 0 : index
      %c2 = arith.constant 2 : index
      %c0_18 = arith.constant 0 : index
      %26 = vector.load %arg4[%c0_17, %c2, %c0_18] : memref<2x25x256xf32, #tpu.memory_space<vmem>>, vector<1x1x256xf32>
      %27 = vector.shape_cast %26 : vector<1x1x256xf32> to vector<1x256xf32>
      %28 = vector.broadcast %27 : vector<1x256xf32> to vector<16x256xf32>
      %29 = arith.mulf %25, %28 : vector<16x256xf32>
      %30 = arith.addf %24, %29 : vector<16x256xf32>
      %c0_19 = arith.constant 0 : index
      %c0_20 = arith.constant 0 : index
      %c2_21 = arith.constant 2 : index
      %c0_22 = arith.constant 0 : index
      %31 = vector.load %arg3[%c0_19, %c0_20, %c2_21, %c0_22] : memref<1x1x20x256xf32, #tpu.memory_space<vmem>>, vector<1x1x16x256xf32>
      %32 = vector.shape_cast %31 : vector<1x1x16x256xf32> to vector<16x256xf32>
      %c16_i32_23 = arith.constant 16 : i32
      %33 = tpu.dynamic_rotate %32 by %c16_i32_23 dim 1 : vector<16x256xf32>, i32 -> vector<16x256xf32>
      %c0_24 = arith.constant 0 : index
      %c3 = arith.constant 3 : index
      %c0_25 = arith.constant 0 : index
      %34 = vector.load %arg4[%c0_24, %c3, %c0_25] : memref<2x25x256xf32, #tpu.memory_space<vmem>>, vector<1x1x256xf32>
      %35 = vector.shape_cast %34 : vector<1x1x256xf32> to vector<1x256xf32>
      %36 = vector.broadcast %35 : vector<1x256xf32> to vector<16x256xf32>
      %37 = arith.mulf %33, %36 : vector<16x256xf32>
      %38 = arith.addf %30, %37 : vector<16x256xf32>
      %c0_26 = arith.constant 0 : index
      %c4 = arith.constant 4 : index
      %c0_27 = arith.constant 0 : index
      %39 = vector.load %arg4[%c0_26, %c4, %c0_27] : memref<2x25x256xf32, #tpu.memory_space<vmem>>, vector<1x1x256xf32>
      %40 = vector.shape_cast %39 : vector<1x1x256xf32> to vector<1x256xf32>
      %41 = vector.broadcast %40 : vector<1x256xf32> to vector<16x256xf32>
      %42 = arith.mulf %32, %41 : vector<16x256xf32>
      %43 = arith.addf %38, %42 : vector<16x256xf32>
      %c240_i32_28 = arith.constant 240 : i32
      %44 = tpu.dynamic_rotate %32 by %c240_i32_28 dim 1 : vector<16x256xf32>, i32 -> vector<16x256xf32>
      %c0_29 = arith.constant 0 : index
      %c5 = arith.constant 5 : index
      %c0_30 = arith.constant 0 : index
      %45 = vector.load %arg4[%c0_29, %c5, %c0_30] : memref<2x25x256xf32, #tpu.memory_space<vmem>>, vector<1x1x256xf32>
      %46 = vector.shape_cast %45 : vector<1x1x256xf32> to vector<1x256xf32>
      %47 = vector.broadcast %46 : vector<1x256xf32> to vector<16x256xf32>
      %48 = arith.mulf %44, %47 : vector<16x256xf32>
      %49 = arith.addf %43, %48 : vector<16x256xf32>
      %c0_31 = arith.constant 0 : index
      %c0_32 = arith.constant 0 : index
      %c3_33 = arith.constant 3 : index
      %c0_34 = arith.constant 0 : index
      %50 = vector.load %arg3[%c0_31, %c0_32, %c3_33, %c0_34] : memref<1x1x20x256xf32, #tpu.memory_space<vmem>>, vector<1x1x16x256xf32>
      %51 = vector.shape_cast %50 : vector<1x1x16x256xf32> to vector<16x256xf32>
      %c16_i32_35 = arith.constant 16 : i32
      %52 = tpu.dynamic_rotate %51 by %c16_i32_35 dim 1 : vector<16x256xf32>, i32 -> vector<16x256xf32>
      %c0_36 = arith.constant 0 : index
      %c6 = arith.constant 6 : index
      %c0_37 = arith.constant 0 : index
      %53 = vector.load %arg4[%c0_36, %c6, %c0_37] : memref<2x25x256xf32, #tpu.memory_space<vmem>>, vector<1x1x256xf32>
      %54 = vector.shape_cast %53 : vector<1x1x256xf32> to vector<1x256xf32>
      %55 = vector.broadcast %54 : vector<1x256xf32> to vector<16x256xf32>
      %56 = arith.mulf %52, %55 : vector<16x256xf32>
      %57 = arith.addf %49, %56 : vector<16x256xf32>
      %c0_38 = arith.constant 0 : index
      %c7 = arith.constant 7 : index
      %c0_39 = arith.constant 0 : index
      %58 = vector.load %arg4[%c0_38, %c7, %c0_39] : memref<2x25x256xf32, #tpu.memory_space<vmem>>, vector<1x1x256xf32>
      %59 = vector.shape_cast %58 : vector<1x1x256xf32> to vector<1x256xf32>
      %60 = vector.broadcast %59 : vector<1x256xf32> to vector<16x256xf32>
      %61 = arith.mulf %51, %60 : vector<16x256xf32>
      %62 = arith.addf %57, %61 : vector<16x256xf32>
      %c240_i32_40 = arith.constant 240 : i32
      %63 = tpu.dynamic_rotate %51 by %c240_i32_40 dim 1 : vector<16x256xf32>, i32 -> vector<16x256xf32>
      %c0_41 = arith.constant 0 : index
      %c8 = arith.constant 8 : index
      %c0_42 = arith.constant 0 : index
      %64 = vector.load %arg4[%c0_41, %c8, %c0_42] : memref<2x25x256xf32, #tpu.memory_space<vmem>>, vector<1x1x256xf32>
      %65 = vector.shape_cast %64 : vector<1x1x256xf32> to vector<1x256xf32>
      %66 = vector.broadcast %65 : vector<1x256xf32> to vector<16x256xf32>
      %67 = arith.mulf %63, %66 : vector<16x256xf32>
      %68 = arith.addf %62, %67 : vector<16x256xf32>
      %69 = arith.mulf %1, %68 : vector<16x256xf32>
      %c0_43 = arith.constant 0 : index
      %c0_44 = arith.constant 0 : index
      %c0_45 = arith.constant 0 : index
      %c0_46 = arith.constant 0 : index
      %70 = vector.load %arg6[%c0_43, %c0_44, %c0_45, %c0_46] : memref<1x1x16x256xf32, #tpu.memory_space<vmem>>, vector<1x1x16x256xf32>
      %71 = vector.shape_cast %70 : vector<1x1x16x256xf32> to vector<16x256xf32>
      %72 = vector.shape_cast %69 : vector<16x256xf32> to vector<1x1x16x256xf32>
      tpu.vector_store %arg6[%c0_43, %c0_44, %c0_45, %c0_46], %72 {strides = array<i32>} : memref<1x1x16x256xf32, #tpu.memory_space<vmem>>, vector<1x1x16x256xf32>,
    } else {
    }
    %c1_i32 = arith.constant 1 : i32
    %5 = arith.cmpi eq, %arg1, %c1_i32 : i32
    %6 = arith.extui %5 : i1 to i32
    %c0_i32_4 = arith.constant 0 : i32
    %7 = arith.cmpi ne, %6, %c0_i32_4 : i32
    scf.if %7 {
      %c1 = arith.constant 1 : index
      %c0_5 = arith.constant 0 : index
      %c0_6 = arith.constant 0 : index
      %8 = vector.load %arg5[%c1, %c0_5, %c0_6] : memref<2x1x256xf32, #tpu.memory_space<vmem>>, vector<1x1x256xf32>
      %9 = vector.shape_cast %8 : vector<1x1x256xf32> to vector<1x256xf32>
      %10 = vector.shape_cast %9 : vector<1x256xf32> to vector<1x256xf32>
      %11 = vector.broadcast %10 : vector<1x256xf32> to vector<16x256xf32>
      %c0_7 = arith.constant 0 : index
      %c0_8 = arith.constant 0 : index
      %c0_9 = arith.constant 0 : index
      %c0_10 = arith.constant 0 : index
      %12 = vector.load %arg3[%c0_7, %c0_8, %c0_9, %c0_10] : memref<1x1x20x256xf32, #tpu.memory_space<vmem>>, vector<1x1x16x256xf32>
      %13 = vector.shape_cast %12 : vector<1x1x16x256xf32> to vector<16x256xf32>
      %c32_i32 = arith.constant 32 : i32
      %14 = tpu.dynamic_rotate %13 by %c32_i32 dim 1 : vector<16x256xf32>, i32 -> vector<16x256xf32>
      %c1_11 = arith.constant 1 : index
      %c0_12 = arith.constant 0 : index
      %c0_13 = arith.constant 0 : index
      %15 = vector.load %arg4[%c1_11, %c0_12, %c0_13] : memref<2x25x256xf32, #tpu.memory_space<vmem>>, vector<1x1x256xf32>
      %16 = vector.shape_cast %15 : vector<1x1x256xf32> to vector<1x256xf32>
      %17 = vector.broadcast %16 : vector<1x256xf32> to vector<16x256xf32>
      %18 = arith.mulf %14, %17 : vector<16x256xf32>
      %19 = arith.addf %11, %18 : vector<16x256xf32>
      %c16_i32 = arith.constant 16 : i32
      %20 = tpu.dynamic_rotate %13 by %c16_i32 dim 1 : vector<16x256xf32>, i32 -> vector<16x256xf32>
      %c1_14 = arith.constant 1 : index
      %c1_15 = arith.constant 1 : index
      %c0_16 = arith.constant 0 : index
      %21 = vector.load %arg4[%c1_14, %c1_15, %c0_16] : memref<2x25x256xf32, #tpu.memory_space<vmem>>, vector<1x1x256xf32>
      %22 = vector.shape_cast %21 : vector<1x1x256xf32> to vector<1x256xf32>
      %23 = vector.broadcast %22 : vector<1x256xf32> to vector<16x256xf32>
      %24 = arith.mulf %20, %23 : vector<16x256xf32>
      %25 = arith.addf %19, %24 : vector<16x256xf32>
      %c1_17 = arith.constant 1 : index
      %c2 = arith.constant 2 : index
      %c0_18 = arith.constant 0 : index
      %26 = vector.load %arg4[%c1_17, %c2, %c0_18] : memref<2x25x256xf32, #tpu.memory_space<vmem>>, vector<1x1x256xf32>
      %27 = vector.shape_cast %26 : vector<1x1x256xf32> to vector<1x256xf32>
      %28 = vector.broadcast %27 : vector<1x256xf32> to vector<16x256xf32>
      %29 = arith.mulf %13, %28 : vector<16x256xf32>
      %30 = arith.addf %25, %29 : vector<16x256xf32>
      %c240_i32 = arith.constant 240 : i32
      %31 = tpu.dynamic_rotate %13 by %c240_i32 dim 1 : vector<16x256xf32>, i32 -> vector<16x256xf32>
      %c1_19 = arith.constant 1 : index
      %c3 = arith.constant 3 : index
      %c0_20 = arith.constant 0 : index
      %32 = vector.load %arg4[%c1_19, %c3, %c0_20] : memref<2x25x256xf32, #tpu.memory_space<vmem>>, vector<1x1x256xf32>
      %33 = vector.shape_cast %32 : vector<1x1x256xf32> to vector<1x256xf32>
      %34 = vector.broadcast %33 : vector<1x256xf32> to vector<16x256xf32>
      %35 = arith.mulf %31, %34 : vector<16x256xf32>
      %36 = arith.addf %30, %35 : vector<16x256xf32>
      %c224_i32 = arith.constant 224 : i32
      %37 = tpu.dynamic_rotate %13 by %c224_i32 dim 1 : vector<16x256xf32>, i32 -> vector<16x256xf32>
      %c1_21 = arith.constant 1 : index
      %c4 = arith.constant 4 : index
      %c0_22 = arith.constant 0 : index
      %38 = vector.load %arg4[%c1_21, %c4, %c0_22] : memref<2x25x256xf32, #tpu.memory_space<vmem>>, vector<1x1x256xf32>
      %39 = vector.shape_cast %38 : vector<1x1x256xf32> to vector<1x256xf32>
      %40 = vector.broadcast %39 : vector<1x256xf32> to vector<16x256xf32>
      %41 = arith.mulf %37, %40 : vector<16x256xf32>
      %42 = arith.addf %36, %41 : vector<16x256xf32>
      %c0_23 = arith.constant 0 : index
      %c0_24 = arith.constant 0 : index
      %c1_25 = arith.constant 1 : index
      %c0_26 = arith.constant 0 : index
      %43 = vector.load %arg3[%c0_23, %c0_24, %c1_25, %c0_26] : memref<1x1x20x256xf32, #tpu.memory_space<vmem>>, vector<1x1x16x256xf32>
      %44 = vector.shape_cast %43 : vector<1x1x16x256xf32> to vector<16x256xf32>
      %c32_i32_27 = arith.constant 32 : i32
      %45 = tpu.dynamic_rotate %44 by %c32_i32_27 dim 1 : vector<16x256xf32>, i32 -> vector<16x256xf32>
      %c1_28 = arith.constant 1 : index
      %c5 = arith.constant 5 : index
      %c0_29 = arith.constant 0 : index
      %46 = vector.load %arg4[%c1_28, %c5, %c0_29] : memref<2x25x256xf32, #tpu.memory_space<vmem>>, vector<1x1x256xf32>
      %47 = vector.shape_cast %46 : vector<1x1x256xf32> to vector<1x256xf32>
      %48 = vector.broadcast %47 : vector<1x256xf32> to vector<16x256xf32>
      %49 = arith.mulf %45, %48 : vector<16x256xf32>
      %50 = arith.addf %42, %49 : vector<16x256xf32>
      %c16_i32_30 = arith.constant 16 : i32
      %51 = tpu.dynamic_rotate %44 by %c16_i32_30 dim 1 : vector<16x256xf32>, i32 -> vector<16x256xf32>
      %c1_31 = arith.constant 1 : index
      %c6 = arith.constant 6 : index
      %c0_32 = arith.constant 0 : index
      %52 = vector.load %arg4[%c1_31, %c6, %c0_32] : memref<2x25x256xf32, #tpu.memory_space<vmem>>, vector<1x1x256xf32>
      %53 = vector.shape_cast %52 : vector<1x1x256xf32> to vector<1x256xf32>
      %54 = vector.broadcast %53 : vector<1x256xf32> to vector<16x256xf32>
      %55 = arith.mulf %51, %54 : vector<16x256xf32>
      %56 = arith.addf %50, %55 : vector<16x256xf32>
      %c1_33 = arith.constant 1 : index
      %c7 = arith.constant 7 : index
      %c0_34 = arith.constant 0 : index
      %57 = vector.load %arg4[%c1_33, %c7, %c0_34] : memref<2x25x256xf32, #tpu.memory_space<vmem>>, vector<1x1x256xf32>
      %58 = vector.shape_cast %57 : vector<1x1x256xf32> to vector<1x256xf32>
      %59 = vector.broadcast %58 : vector<1x256xf32> to vector<16x256xf32>
      %60 = arith.mulf %44, %59 : vector<16x256xf32>
      %61 = arith.addf %56, %60 : vector<16x256xf32>
      %c240_i32_35 = arith.constant 240 : i32
      %62 = tpu.dynamic_rotate %44 by %c240_i32_35 dim 1 : vector<16x256xf32>, i32 -> vector<16x256xf32>
      %c1_36 = arith.constant 1 : index
      %c8 = arith.constant 8 : index
      %c0_37 = arith.constant 0 : index
      %63 = vector.load %arg4[%c1_36, %c8, %c0_37] : memref<2x25x256xf32, #tpu.memory_space<vmem>>, vector<1x1x256xf32>
      %64 = vector.shape_cast %63 : vector<1x1x256xf32> to vector<1x256xf32>
      %65 = vector.broadcast %64 : vector<1x256xf32> to vector<16x256xf32>
      %66 = arith.mulf %62, %65 : vector<16x256xf32>
      %67 = arith.addf %61, %66 : vector<16x256xf32>
      %c224_i32_38 = arith.constant 224 : i32
      %68 = tpu.dynamic_rotate %44 by %c224_i32_38 dim 1 : vector<16x256xf32>, i32 -> vector<16x256xf32>
      %c1_39 = arith.constant 1 : index
      %c9 = arith.constant 9 : index
      %c0_40 = arith.constant 0 : index
      %69 = vector.load %arg4[%c1_39, %c9, %c0_40] : memref<2x25x256xf32, #tpu.memory_space<vmem>>, vector<1x1x256xf32>
      %70 = vector.shape_cast %69 : vector<1x1x256xf32> to vector<1x256xf32>
      %71 = vector.broadcast %70 : vector<1x256xf32> to vector<16x256xf32>
      %72 = arith.mulf %68, %71 : vector<16x256xf32>
      %73 = arith.addf %67, %72 : vector<16x256xf32>
      %c0_41 = arith.constant 0 : index
      %c0_42 = arith.constant 0 : index
      %c2_43 = arith.constant 2 : index
      %c0_44 = arith.constant 0 : index
      %74 = vector.load %arg3[%c0_41, %c0_42, %c2_43, %c0_44] : memref<1x1x20x256xf32, #tpu.memory_space<vmem>>, vector<1x1x16x256xf32>
      %75 = vector.shape_cast %74 : vector<1x1x16x256xf32> to vector<16x256xf32>
      %c32_i32_45 = arith.constant 32 : i32
      %76 = tpu.dynamic_rotate %75 by %c32_i32_45 dim 1 : vector<16x256xf32>, i32 -> vector<16x256xf32>
      %c1_46 = arith.constant 1 : index
      %c10 = arith.constant 10 : index
      %c0_47 = arith.constant 0 : index
      %77 = vector.load %arg4[%c1_46, %c10, %c0_47] : memref<2x25x256xf32, #tpu.memory_space<vmem>>, vector<1x1x256xf32>
      %78 = vector.shape_cast %77 : vector<1x1x256xf32> to vector<1x256xf32>
      %79 = vector.broadcast %78 : vector<1x256xf32> to vector<16x256xf32>
      %80 = arith.mulf %76, %79 : vector<16x256xf32>
      %81 = arith.addf %73, %80 : vector<16x256xf32>
      %c16_i32_48 = arith.constant 16 : i32
      %82 = tpu.dynamic_rotate %75 by %c16_i32_48 dim 1 : vector<16x256xf32>, i32 -> vector<16x256xf32>
      %c1_49 = arith.constant 1 : index
      %c11 = arith.constant 11 : index
      %c0_50 = arith.constant 0 : index
      %83 = vector.load %arg4[%c1_49, %c11, %c0_50] : memref<2x25x256xf32, #tpu.memory_space<vmem>>, vector<1x1x256xf32>
      %84 = vector.shape_cast %83 : vector<1x1x256xf32> to vector<1x256xf32>
      %85 = vector.broadcast %84 : vector<1x256xf32> to vector<16x256xf32>
      %86 = arith.mulf %82, %85 : vector<16x256xf32>
      %87 = arith.addf %81, %86 : vector<16x256xf32>
      %c1_51 = arith.constant 1 : index
      %c12 = arith.constant 12 : index
      %c0_52 = arith.constant 0 : index
      %88 = vector.load %arg4[%c1_51, %c12, %c0_52] : memref<2x25x256xf32, #tpu.memory_space<vmem>>, vector<1x1x256xf32>
      %89 = vector.shape_cast %88 : vector<1x1x256xf32> to vector<1x256xf32>
      %90 = vector.broadcast %89 : vector<1x256xf32> to vector<16x256xf32>
      %91 = arith.mulf %75, %90 : vector<16x256xf32>
      %92 = arith.addf %87, %91 : vector<16x256xf32>
      %c240_i32_53 = arith.constant 240 : i32
      %93 = tpu.dynamic_rotate %75 by %c240_i32_53 dim 1 : vector<16x256xf32>, i32 -> vector<16x256xf32>
      %c1_54 = arith.constant 1 : index
      %c13 = arith.constant 13 : index
      %c0_55 = arith.constant 0 : index
      %94 = vector.load %arg4[%c1_54, %c13, %c0_55] : memref<2x25x256xf32, #tpu.memory_space<vmem>>, vector<1x1x256xf32>
      %95 = vector.shape_cast %94 : vector<1x1x256xf32> to vector<1x256xf32>
      %96 = vector.broadcast %95 : vector<1x256xf32> to vector<16x256xf32>
      %97 = arith.mulf %93, %96 : vector<16x256xf32>
      %98 = arith.addf %92, %97 : vector<16x256xf32>
      %c224_i32_56 = arith.constant 224 : i32
      %99 = tpu.dynamic_rotate %75 by %c224_i32_56 dim 1 : vector<16x256xf32>, i32 -> vector<16x256xf32>
      %c1_57 = arith.constant 1 : index
      %c14 = arith.constant 14 : index
      %c0_58 = arith.constant 0 : index
      %100 = vector.load %arg4[%c1_57, %c14, %c0_58] : memref<2x25x256xf32, #tpu.memory_space<vmem>>, vector<1x1x256xf32>
      %101 = vector.shape_cast %100 : vector<1x1x256xf32> to vector<1x256xf32>
      %102 = vector.broadcast %101 : vector<1x256xf32> to vector<16x256xf32>
      %103 = arith.mulf %99, %102 : vector<16x256xf32>
      %104 = arith.addf %98, %103 : vector<16x256xf32>
      %c0_59 = arith.constant 0 : index
      %c0_60 = arith.constant 0 : index
      %c3_61 = arith.constant 3 : index
      %c0_62 = arith.constant 0 : index
      %105 = vector.load %arg3[%c0_59, %c0_60, %c3_61, %c0_62] : memref<1x1x20x256xf32, #tpu.memory_space<vmem>>, vector<1x1x16x256xf32>
      %106 = vector.shape_cast %105 : vector<1x1x16x256xf32> to vector<16x256xf32>
      %c32_i32_63 = arith.constant 32 : i32
      %107 = tpu.dynamic_rotate %106 by %c32_i32_63 dim 1 : vector<16x256xf32>, i32 -> vector<16x256xf32>
      %c1_64 = arith.constant 1 : index
      %c15 = arith.constant 15 : index
      %c0_65 = arith.constant 0 : index
      %108 = vector.load %arg4[%c1_64, %c15, %c0_65] : memref<2x25x256xf32, #tpu.memory_space<vmem>>, vector<1x1x256xf32>
      %109 = vector.shape_cast %108 : vector<1x1x256xf32> to vector<1x256xf32>
      %110 = vector.broadcast %109 : vector<1x256xf32> to vector<16x256xf32>
      %111 = arith.mulf %107, %110 : vector<16x256xf32>
      %112 = arith.addf %104, %111 : vector<16x256xf32>
      %c16_i32_66 = arith.constant 16 : i32
      %113 = tpu.dynamic_rotate %106 by %c16_i32_66 dim 1 : vector<16x256xf32>, i32 -> vector<16x256xf32>
      %c1_67 = arith.constant 1 : index
      %c16 = arith.constant 16 : index
      %c0_68 = arith.constant 0 : index
      %114 = vector.load %arg4[%c1_67, %c16, %c0_68] : memref<2x25x256xf32, #tpu.memory_space<vmem>>, vector<1x1x256xf32>
      %115 = vector.shape_cast %114 : vector<1x1x256xf32> to vector<1x256xf32>
      %116 = vector.broadcast %115 : vector<1x256xf32> to vector<16x256xf32>
      %117 = arith.mulf %113, %116 : vector<16x256xf32>
      %118 = arith.addf %112, %117 : vector<16x256xf32>
      %c1_69 = arith.constant 1 : index
      %c17 = arith.constant 17 : index
      %c0_70 = arith.constant 0 : index
      %119 = vector.load %arg4[%c1_69, %c17, %c0_70] : memref<2x25x256xf32, #tpu.memory_space<vmem>>, vector<1x1x256xf32>
      %120 = vector.shape_cast %119 : vector<1x1x256xf32> to vector<1x256xf32>
      %121 = vector.broadcast %120 : vector<1x256xf32> to vector<16x256xf32>
      %122 = arith.mulf %106, %121 : vector<16x256xf32>
      %123 = arith.addf %118, %122 : vector<16x256xf32>
      %c240_i32_71 = arith.constant 240 : i32
      %124 = tpu.dynamic_rotate %106 by %c240_i32_71 dim 1 : vector<16x256xf32>, i32 -> vector<16x256xf32>
      %c1_72 = arith.constant 1 : index
      %c18 = arith.constant 18 : index
      %c0_73 = arith.constant 0 : index
      %125 = vector.load %arg4[%c1_72, %c18, %c0_73] : memref<2x25x256xf32, #tpu.memory_space<vmem>>, vector<1x1x256xf32>
      %126 = vector.shape_cast %125 : vector<1x1x256xf32> to vector<1x256xf32>
      %127 = vector.broadcast %126 : vector<1x256xf32> to vector<16x256xf32>
      %128 = arith.mulf %124, %127 : vector<16x256xf32>
      %129 = arith.addf %123, %128 : vector<16x256xf32>
      %c224_i32_74 = arith.constant 224 : i32
      %130 = tpu.dynamic_rotate %106 by %c224_i32_74 dim 1 : vector<16x256xf32>, i32 -> vector<16x256xf32>
      %c1_75 = arith.constant 1 : index
      %c19 = arith.constant 19 : index
      %c0_76 = arith.constant 0 : index
      %131 = vector.load %arg4[%c1_75, %c19, %c0_76] : memref<2x25x256xf32, #tpu.memory_space<vmem>>, vector<1x1x256xf32>
      %132 = vector.shape_cast %131 : vector<1x1x256xf32> to vector<1x256xf32>
      %133 = vector.broadcast %132 : vector<1x256xf32> to vector<16x256xf32>
      %134 = arith.mulf %130, %133 : vector<16x256xf32>
      %135 = arith.addf %129, %134 : vector<16x256xf32>
      %c0_77 = arith.constant 0 : index
      %c0_78 = arith.constant 0 : index
      %c4_79 = arith.constant 4 : index
      %c0_80 = arith.constant 0 : index
      %136 = vector.load %arg3[%c0_77, %c0_78, %c4_79, %c0_80] : memref<1x1x20x256xf32, #tpu.memory_space<vmem>>, vector<1x1x16x256xf32>
      %137 = vector.shape_cast %136 : vector<1x1x16x256xf32> to vector<16x256xf32>
      %c32_i32_81 = arith.constant 32 : i32
      %138 = tpu.dynamic_rotate %137 by %c32_i32_81 dim 1 : vector<16x256xf32>, i32 -> vector<16x256xf32>
      %c1_82 = arith.constant 1 : index
      %c20 = arith.constant 20 : index
      %c0_83 = arith.constant 0 : index
      %139 = vector.load %arg4[%c1_82, %c20, %c0_83] : memref<2x25x256xf32, #tpu.memory_space<vmem>>, vector<1x1x256xf32>
      %140 = vector.shape_cast %139 : vector<1x1x256xf32> to vector<1x256xf32>
      %141 = vector.broadcast %140 : vector<1x256xf32> to vector<16x256xf32>
      %142 = arith.mulf %138, %141 : vector<16x256xf32>
      %143 = arith.addf %135, %142 : vector<16x256xf32>
      %c16_i32_84 = arith.constant 16 : i32
      %144 = tpu.dynamic_rotate %137 by %c16_i32_84 dim 1 : vector<16x256xf32>, i32 -> vector<16x256xf32>
      %c1_85 = arith.constant 1 : index
      %c21 = arith.constant 21 : index
      %c0_86 = arith.constant 0 : index
      %145 = vector.load %arg4[%c1_85, %c21, %c0_86] : memref<2x25x256xf32, #tpu.memory_space<vmem>>, vector<1x1x256xf32>
      %146 = vector.shape_cast %145 : vector<1x1x256xf32> to vector<1x256xf32>
      %147 = vector.broadcast %146 : vector<1x256xf32> to vector<16x256xf32>
      %148 = arith.mulf %144, %147 : vector<16x256xf32>
      %149 = arith.addf %143, %148 : vector<16x256xf32>
      %c1_87 = arith.constant 1 : index
      %c22 = arith.constant 22 : index
      %c0_88 = arith.constant 0 : index
      %150 = vector.load %arg4[%c1_87, %c22, %c0_88] : memref<2x25x256xf32, #tpu.memory_space<vmem>>, vector<1x1x256xf32>
      %151 = vector.shape_cast %150 : vector<1x1x256xf32> to vector<1x256xf32>
      %152 = vector.broadcast %151 : vector<1x256xf32> to vector<16x256xf32>
      %153 = arith.mulf %137, %152 : vector<16x256xf32>
      %154 = arith.addf %149, %153 : vector<16x256xf32>
      %c240_i32_89 = arith.constant 240 : i32
      %155 = tpu.dynamic_rotate %137 by %c240_i32_89 dim 1 : vector<16x256xf32>, i32 -> vector<16x256xf32>
      %c1_90 = arith.constant 1 : index
      %c23 = arith.constant 23 : index
      %c0_91 = arith.constant 0 : index
      %156 = vector.load %arg4[%c1_90, %c23, %c0_91] : memref<2x25x256xf32, #tpu.memory_space<vmem>>, vector<1x1x256xf32>
      %157 = vector.shape_cast %156 : vector<1x1x256xf32> to vector<1x256xf32>
      %158 = vector.broadcast %157 : vector<1x256xf32> to vector<16x256xf32>
      %159 = arith.mulf %155, %158 : vector<16x256xf32>
      %160 = arith.addf %154, %159 : vector<16x256xf32>
      %c224_i32_92 = arith.constant 224 : i32
      %161 = tpu.dynamic_rotate %137 by %c224_i32_92 dim 1 : vector<16x256xf32>, i32 -> vector<16x256xf32>
      %c1_93 = arith.constant 1 : index
      %c24 = arith.constant 24 : index
      %c0_94 = arith.constant 0 : index
      %162 = vector.load %arg4[%c1_93, %c24, %c0_94] : memref<2x25x256xf32, #tpu.memory_space<vmem>>, vector<1x1x256xf32>
      %163 = vector.shape_cast %162 : vector<1x1x256xf32> to vector<1x256xf32>
      %164 = vector.broadcast %163 : vector<1x256xf32> to vector<16x256xf32>
      %165 = arith.mulf %161, %164 : vector<16x256xf32>
      %166 = arith.addf %160, %165 : vector<16x256xf32>
      %167 = arith.mulf %1, %166 : vector<16x256xf32>
      %c0_95 = arith.constant 0 : index
      %c0_96 = arith.constant 0 : index
      %c0_97 = arith.constant 0 : index
      %c0_98 = arith.constant 0 : index
      %168 = vector.load %arg6[%c0_95, %c0_96, %c0_97, %c0_98] : memref<1x1x16x256xf32, #tpu.memory_space<vmem>>, vector<1x1x16x256xf32>
      %169 = vector.shape_cast %168 : vector<1x1x16x256xf32> to vector<16x256xf32>
      %170 = vector.shape_cast %167 : vector<16x256xf32> to vector<1x1x16x256xf32>
      tpu.vector_store %arg6[%c0_95, %c0_96, %c0_97, %c0_98], %170 {strides = array<i32>} : memref<1x1x16x256xf32, #tpu.memory_space<vmem>>, vector<1x1x16x256xf32>,
    } else {
    }
    return
  }
  func.func @transform_0(%arg0: i32, %arg1: i32) -> (i32, i32, i32, i32) {
    %c0_i32 = arith.constant 0 : i32
    %c0_i32_0 = arith.constant 0 : i32
    %c0_i32_1 = arith.constant 0 : i32
    return %arg0, %arg1, %c0_i32, %c0_i32_0 : i32, i32, i32, i32
  }
  func.func @transform_1(%arg0: i32, %arg1: i32) -> (i32, i32, i32, i32) {
    %c0_i32 = arith.constant 0 : i32
    %c0_i32_0 = arith.constant 0 : i32
    %c0_i32_1 = arith.constant 0 : i32
    return %arg0, %arg1, %c0_i32, %c0_i32_0 : i32, i32, i32, i32
  }
  func.func @transform_2(%arg0: i32, %arg1: i32) -> (i32, i32, i32) {
    %c0_i32 = arith.constant 0 : i32
    %c0_i32_0 = arith.constant 0 : i32
    %c0_i32_1 = arith.constant 0 : i32
    %c0_i32_2 = arith.constant 0 : i32
    return %c0_i32, %c0_i32_0, %c0_i32_1 : i32, i32, i32
  }
  func.func @transform_3(%arg0: i32, %arg1: i32) -> (i32, i32, i32) {
    %c0_i32 = arith.constant 0 : i32
    %c0_i32_0 = arith.constant 0 : i32
    %c0_i32_1 = arith.constant 0 : i32
    %c0_i32_2 = arith.constant 0 : i32
    return %c0_i32, %c0_i32_0, %c0_i32_1 : i32, i32, i32
  }
  func.func @transform_4(%arg0: i32, %arg1: i32) -> (i32, i32, i32, i32) {
    %c0_i32 = arith.constant 0 : i32
    %c0_i32_0 = arith.constant 0 : i32
    %c0_i32_1 = arith.constant 0 : i32
    return %arg0, %arg1, %c0_i32, %c0_i32_0 : i32, i32, i32, i32
  }
}

</mosaic_0001>

<bundles_post_ra>
// kernel: tile.17
= control target key start
LH: loop header
LB: loop body
LE: loop exit
PB: predicated region body
PF: predicated region fallthrough
CT: control target
= control target key end

     0   :  { %s28_s0 = inlined_call_operand.vmem [shape: f32[16], index: 0, kind: input, shape index: {}]   ;;  %s29_s1 = inlined_call_operand.vmem [shape: f32[16,16], index: 1, kind: output, shape index: {}]  }
   0x1   :  { %v4_v0 = vld [vmem:[%s28_s0] ss:$0 sm:$0xff] }
   0x2   :  { %5 = vst [vmem:[%s29_s1] sm:$0xff] %v4_v0  ;;  %8 = vst [vmem:[%s29_s1 + $0x8] sm:$0xff] %v4_v0 }

// kernel: tile.19
= control target key start
LH: loop header
LB: loop body
LE: loop exit
PB: predicated region body
PF: predicated region fallthrough
CT: control target
= control target key end

     0   :  { %s7_s6 = smov 3  ;;  %s21_s9 = smov 3  ;;  %vm4_vm0 = vcmask 130048   ;;  %vm11_vm1 = vcmask 1048448   ;;  %vm18_vm2 = vcmask 917248   ;;  %vm25_vm3 = vcmask 786048   ;;  %s128_s0 = inlined_call_operand.vmem [shape: f32[16,16], index: 0, kind: input, shape index: {}]   ;;  %s129_s1 = inlined_call_operand.vmem [shape: f32[1,1,256], index: 1, kind: output, shape index: {}]  }
   0x1   :  { %v66_v0 = vld [vmem:[%s128_s0 + $0x7] ss:$8 sm:%s7_s6]   ;;  %s81_s10 = smov 112   ;;  %v68_v1 = vld [vmem:[%s128_s0 + $0x5] ss:$8 sm:%s21_s9]   ;;  %s14_s13 = smov 3 }
   0x2   :  { %9 = vrot.lane.b32.xlu0 %v66_v0, %s81_s10  ;;  %s82_s14 = smov 80   ;;  %v67_v2 = vld [vmem:[%s128_s0 + $0x6] ss:$8 sm:%s14_s13]   ;;  %s28_s17 = smov 3  ;;  %vm32_vm4 = vcmask 654848   ;;  %vm39_vm5 = vcmask 523648  }
   0x3   :  { %23 = vrot.lane.b32.xlu1 %v68_v1, %s82_s14  ;;  %v69_v3 = vld [vmem:[%s128_s0 + $0x4] ss:$8 sm:%s28_s17]   ;;  %s35_s20 = smov 3  ;;  %s42_s21 = smov 3  ;;  %vm46_vm6 = vcmask 392448   ;;  %vm53_vm7 = vcmask 261248  }
   0x4   :  { %s83_s22 = smov 96   ;;  %s84_s23 = smov 64   ;;  %v70_v4 = vld [vmem:[%s128_s0 + $0x3] ss:$8 sm:%s35_s20]   ;;  %v71_v5 = vld [vmem:[%s128_s0 + $0x2] ss:$8 sm:%s42_s21]  }
   0x5   :  { %s2_s26 = smov 3  ;;  %s49_s29 = smov 3 }
   0x6   :  { %16 = vrot.lane.b32.xlu0 %v67_v2, %s83_s22  ;;  %v3_v6 = vld [vmem:[%s128_s0] ss:$8 sm:%s2_s26]   ;;  %s85_s3 = smov 48   ;;  %s86_s4 = smov 32  }
   0x7   :  { %30 = vrot.lane.b32.xlu1 %v69_v3, %s84_s23  ;;  %5 = vst.msk [vmem:[#allocation0] ss:$8 sm:$0x3] %vm4_vm0, %v3_v6   ;;  %v72_v7 = vld [vmem:[%s128_s0 + $0x1] ss:$8 sm:%s49_s29]   ;;  %s87_s0 = smov 16  }
   0xa   :  { %37 = vrot.lane.b32.xlu0 %v70_v4, %s85_s3 }
   0xb   :  { %44 = vrot.lane.b32.xlu1 %v71_v5, %s86_s4 }
   0xe   :  { %51 = vrot.lane.b32.xlu0 %v72_v7, %s87_s0 }
  0x74   :  { %v10_v8 = vpop.permute.xlu0 %9  }
  0x75   :  { %12 = vst.msk [vmem:[#allocation0] ss:$8 sm:$0x3] %vm11_vm1, %v10_v8   ;;  %v24_v9 = vpop.permute.xlu1 %23  }
  0x78   :  { %v17_v10 = vpop.permute.xlu0 %16  }
  0x79   :  { %19 = vst.msk [vmem:[#allocation0] ss:$8 sm:$0x3] %vm18_vm2, %v17_v10   ;;  %v31_v11 = vpop.permute.xlu1 %30  }
  0x7a   :  { %26 = vst.msk [vmem:[#allocation0] ss:$8 sm:$0x3] %vm25_vm3, %v24_v9  }
  0x7b   :  { %33 = vst.msk [vmem:[#allocation0] ss:$8 sm:$0x3] %vm32_vm4, %v31_v11  }
  0x7c   :  { %v38_v12 = vpop.permute.xlu0 %37  }
  0x7d   :  { %40 = vst.msk [vmem:[#allocation0] ss:$8 sm:$0x3] %vm39_vm5, %v38_v12   ;;  %v45_v13 = vpop.permute.xlu1 %44  }
  0x7e   :  { %47 = vst.msk [vmem:[#allocation0] ss:$8 sm:$0x3] %vm46_vm6, %v45_v13  }
  0x80   :  { %v52_v14 = vpop.permute.xlu0 %51  }
  0x81   :  { %54 = vst.msk [vmem:[#allocation0] ss:$8 sm:$0x3] %vm53_vm7, %v52_v14  }
  0x88   :  { %v58_v15 = vld [vmem:[#allocation0] sm:$0x1]  ;;  %v62_v16 = vld [vmem:[#allocation0 + $0x8] sm:$0x1] }
  0x89   :  { %60 = vst [vmem:[%s129_s1] sm:$0x1] %v58_v15  ;;  %73 = vst [vmem:[%s129_s1 + $0x1] sm:$0x1] %v62_v16 }

// kernel: _lambda_.1
= control target key start
LH: loop header
LB: loop body
LE: loop exit
PB: predicated region body
PF: predicated region fallthrough
CT: control target
= control target key end

     0   :  { %s1994_s15 = smov 0   ;;  %s1996_s16 = smov 0   ;;  %s2899_s0 = inlined_call_operand.vmem [shape: f32[2,2,16,256], index: 0, kind: input, shape index: {}]   ;;  %s2900_s1 = inlined_call_operand.vmem [shape: f32[2,2,20,256], index: 1, kind: input, shape index: {}]   ;;  %s2901_s2 = inlined_call_operand.vmem [shape: f32[2,25,256], index: 2, kind: input, shape index: {}]   ;;  %s2902_s3 = inlined_call_operand.vmem [shape: f32[2,1,256], index: 3, kind: input, shape index: {}]   ;;  %s2903_s4 = inlined_call_operand.vmem [shape: f32[2,2,16,256], index: 4, kind: output, shape index: {}]  }
   0x1   :  { %s1998_s17 = smov 0   ;;  %s2000_s18 = smov 0  }
   0x2   :  { %s2002_s19 = smov 0  }
   0x3 LB: > { %s23_s20 = sadd.s32 1, %s1953_s17  ;;  %s26_s21 = sadd.s32 1, %s1957_s18  ;;  %s1961_s19 = sphi %s2002_s19, %s14_s19   ;;  %s1957_s18 = sphi %s2000_s18, %s2907_s18   ;;  %s1953_s17 = sphi %s1998_s17, %s2906_s17   ;;  %s1949_s16 = sphi %s1996_s16, %s2905_s16   ;;  %s1945_s15 = sphi %s1994_s15, %s2904_s15  }
   0x4   : > { %p24_p0 = scmp.ge.s32.totalorder %s23_s20, 2  ;;  %p1827_p1 = scmp.ge.s32.totalorder %s1961_s19, 1 }
   0x5   : > { %p198_p2 = scmp.lt.s32.totalorder %s1961_s19, 5 }
   0x6   : > { %s2909_s20 = smov (%p24_p0, %s23_s20), 0  ;;  %s2911_s21 = smov (!%p24_p0, %s26_s21), %s1957_s18 }
   0x7   : > { %p199_p3 = pnand %p1827_p1, %p198_p2  ;;  %p28_p4 = scmp.ge.s32.totalorder %s2911_s21, 2 }
   0x8   : > { %p241_p5 = scmp.lt.s32.totalorder (!%p199_p3), %s1949_s16, 1  ;;  %p243_p6 = scmp.lt.s32.totalorder (!%p199_p3), %s1945_s15, 1 }
   0x9   : > { %s2913_s21 = smov (%p28_p4, %s2911_s21), 0  ;;  %202 = sbr.rel (%p199_p3) target bundleno = 479 (0x1df), region = 36 }
   0xa   : > { %p1835_p7 = scmp.ne.s32.totalorder (!%p199_p3), %s1945_s15, 0 }
  0x10   : > { %s2915_s16 = smov (!%p241_p5, %s1949_s16), 1  ;;  %vm300_vm0 = vcmask (!%p1835_p7), 1046528   ;;  %v278_v6 = vlaneseq (!%p1835_p7)  ;;  %s1963_s14 = smov (!%p1835_p7), 16   ;;  %v1836_v23 = vld [vmem:[%s2901_s2 + $0x1] ss:$8 sm:$0x3] (!%p1835_p7) }
  0x11   : > { %s244_s22 = scalar_select %p243_p6, %s1945_s15, 1 }
  0x12   : > { %s1829_s23 = sshll.u32 %s2915_s16, 3  ;;  %s1874_s24 = smul.u32 12, %s2915_s16  ;;  %v279_v11 = vshrl.u32 (!%p1835_p7), %v278_v6, 7  ;;  %v1839_v25 = vld [vmem:[%s2901_s2 + $0x4] ss:$8 sm:$0x3] (!%p1835_p7) }
  0x13   : > { %s1828_s25 = sshll.u32 %s244_s22, 2  ;;  %s1873_s26 = smul.u32 6, %s244_s22  ;;  %vm435_vm1 = vcmask (!%p1835_p7), 1045504   ;;  %v1842_v48 = vld [vmem:[%s2901_s2 + $0x7] ss:$8 sm:$0x3] (!%p1835_p7) }
  0x14   : > { %s247_s27 = sadd.s32 %s1829_s23, %s1828_s25  ;;  %275 = sbr.rel (%p1835_p7) target bundleno = 197 (0xc5), region = 40  ;;  %v2067_v21 = vsub.s32 (!%p1835_p7), 1, %v279_v11  ;;  %v2070_v22 = vsub.s32 (!%p1835_p7), 0, %v279_v11  ;;  %vm567_vm2 = vcmask (!%p1835_p7), 1044480  }
  0x15   : > { %s1830_s28 = sshll.u32 %s247_s27, 3  ;;  %s256_s29 = sadd.s32 %s1874_s24, %s1873_s26 }
  0x16   : > { %s249_s6 = scalar_lea.vmem %s2899_s0, %s1830_s28  ;;  %s1831_s7 = sshll.u32 %s256_s29, 3  ;;  %v360_v26 = vrot.slane (!%p1835_p7), %v1836_v23, %v2067_v21  ;;  %v356_v27 = vrot.slane (!%p1835_p7), %v1836_v23, %v2070_v22  ;;  %v489_v30 = vrot.slane (!%p1835_p7), %v1839_v25, %v2070_v22  ;;  %v493_v37 = vrot.slane (!%p1835_p7), %v1839_v25, %v2067_v21 }
  0x17   : > { %s2034_s10 = scalar_lea.vmem %s2900_s1, %s1831_s7  ;;  %s2039_s13 = scalar_lea.vmem %s2903_s4, %s1830_s28  ;;  %v2041_v0 = vld [vmem:[%s249_s6] sm:$0xff]  ;;  %v2043_v1 = vld [vmem:[%s249_s6 + $0x8] sm:$0xff]  ;;  %v2045_v2 = vld [vmem:[%s249_s6 + $0x10] sm:$0xff]  ;;  %v621_v60 = vrot.slane (!%p1835_p7), %v1842_v48, %v2070_v22  ;;  %v625_v62 = vrot.slane (!%p1835_p7), %v1842_v48, %v2067_v21 }
  0x18   : > { %v2047_v3 = vld [vmem:[%s249_s6 + $0x18] sm:$0xff]  ;;  %v289_v4 = vld [vmem:[%s2034_s10 + $0x8] sm:$0xfe] (!%p1835_p7)  ;;  %v2055_v7 = vld [vmem:[%s2034_s10 + $0x10] sm:$0xff] (!%p1835_p7)  ;;  %s1964_s25 = smov (!%p1835_p7), 112  }
  0x19   : > { %v2052_v5 = vld [vmem:[%s2034_s10 + $0x18] sm:$0xff] (!%p1835_p7)  ;;  %v304_v8 = vrot.slane (!%p1835_p7), %v289_v4, 1  ;;  %v302_v10 = vrot.slane (!%p1835_p7), %v2055_v7, 1  ;;  %v288_v12 = vld [vmem:[%s2034_s10] sm:$0xfe] (!%p1835_p7)  ;;  %v437_v31 = vrot.slane (!%p1835_p7), %v2055_v7, 2  ;;  %v364_v35 = vmul.f32 (!%p1835_p7), %v360_v26, %v289_v4 }
  0x1a   : > { %v305_v9 = vrot.slane (!%p1835_p7), %v2052_v5, 1  ;;  %v293_v13 = vld [vmem:[%s2034_s10 + $0x28] sm:$0x1] (!%p1835_p7)  ;;  %v301_v15 = vrot.slane (!%p1835_p7), %v288_v12, 1  ;;  %v292_v17 = vld [vmem:[%s2034_s10 + $0x20] sm:$0x1] (!%p1835_p7)  ;;  %v363_v36 = vmul.f32 (!%p1835_p7), %v356_v27, %v288_v12  ;;  %v365_v55 = vmul.f32 (!%p1835_p7), %v356_v27, %v2055_v7 }
  0x1b   : > { %v309_v16 = vrot.slane %v293_v13, 1  ;;  %v307_v18 = vrot.slane %v292_v17, 1  ;;  %v429_v28 = vld [vmem:[%s2034_s10 + $0x20] sm:$0x3]  ;;  %v427_v29 = vld [vmem:[%s2034_s10] sm:$0xfc]  ;;  %v368_v39 = vmul.f32 %v360_v26, %v293_v13  ;;  %v367_v40 = vmul.f32 %v356_v27, %v292_v17 }
  0x1c   : > { %v306_v14 = vsel %vm300_vm0, %v304_v8, %v305_v9  ;;  %v303_v19 = vsel %vm300_vm0, %v301_v15, %v302_v10  ;;  %v442_v32 = vrot.slane %v429_v28, 2  ;;  %v436_v33 = vrot.slane %v427_v29, 2  ;;  %v430_v34 = vld [vmem:[%s2034_s10 + $0x28] sm:$0x3]  ;;  %v428_v38 = vld [vmem:[%s2034_s10 + $0x8] sm:$0xfc] }
  0x1d   : > { %319 = vrot.lane.b32.xlu1 %v306_v14, %s1963_s14  ;;  %v310_v20 = vsel %vm300_vm0, %v305_v9, %v309_v16  ;;  %315 = vrot.lane.b32.xlu0 %v303_v19, %s1963_s14  ;;  %v308_v24 = vsel %vm300_vm0, %v302_v10, %v307_v18  ;;  %v500_v41 = vmul.f32 %v489_v30, %v429_v28  ;;  %v440_v43 = vrot.slane %v2052_v5, 2  ;;  %v561_v12 = vld [vmem:[%s2034_s10 + $0x20] sm:$0x7]  ;;  %v559_v13 = vld [vmem:[%s2034_s10] sm:$0xf8] }
  0x1e   : > { %v496_v42 = vmul.f32 %v489_v30, %v427_v29  ;;  %v444_v44 = vrot.slane %v430_v34, 2  ;;  %v443_v45 = vsel %vm435_vm1, %v437_v31, %v442_v32  ;;  %v438_v46 = vsel %vm435_vm1, %v436_v33, %v437_v31  ;;  %v560_v23 = vld [vmem:[%s2034_s10 + $0x8] sm:$0xf8] }
  0x1f   : > { %v439_v47 = vrot.slane %v428_v38, 2  ;;  %v378_v49 = vrot.slane %v364_v35, 1  ;;  %v375_v50 = vrot.slane %v363_v36, 1  ;;  %v501_v51 = vmul.f32 %v493_v37, %v430_v34 }
  0x20   : > { %v497_v52 = vmul.f32 %v493_v37, %v428_v38  ;;  %v383_v53 = vrot.slane %v368_v39, 1  ;;  %v381_v54 = vrot.slane %v367_v40, 1  ;;  %v366_v56 = vmul.f32 %v360_v26, %v2052_v5 }
  0x21   : > { %321 = vrot.lane.b32.xlu1 %v310_v20, %s1963_s14  ;;  %317 = vrot.lane.b32.xlu0 %v308_v24, %s1963_s14  ;;  %v514_v57 = vrot.slane %v500_v41, 2  ;;  %v508_v58 = vrot.slane %v496_v42, 2  ;;  %v445_v59 = vsel %vm435_vm1, %v440_v43, %v444_v44  ;;  %v441_v61 = vsel %vm435_vm1, %v439_v47, %v440_v43 }
  0x22   : > { %v376_v63 = vrot.slane %v365_v55, 1  ;;  %v379_v4 = vrot.slane %v366_v56, 1  ;;  %v516_v8 = vrot.slane %v501_v51, 2  ;;  %v511_v9 = vrot.slane %v497_v52, 2 }
  0x23   : > { %v498_v10 = vmul.f32 %v489_v30, %v2055_v7  ;;  %v499_v11 = vmul.f32 %v493_v37, %v2052_v5  ;;  %v632_v18 = vmul.f32 %v621_v60, %v561_v12  ;;  %v629_v27 = vmul.f32 %v625_v62, %v560_v23  ;;  %v330_v56 = vld [vmem:[%s2901_s2] ss:$8 sm:$0x3] }
  0x24   : > { %v2116_v15 = vsel %vm300_vm0, %v379_v4, %v383_v53  ;;  %v2119_v16 = vsel %vm300_vm0, %v375_v50, %v376_v63  ;;  %v2122_v17 = vsel %vm300_vm0, %v378_v49, %v379_v4  ;;  %v569_v32 = vrot.slane %v2055_v7, 3 }
  0x25   : > { %395 = vrot.lane.b32.xlu1 %v308_v24, %s1964_s25  ;;  %393 = vrot.lane.b32.xlu0 %v303_v19, %s1964_s25  ;;  %v628_v19 = vmul.f32 %v621_v60, %v559_v13  ;;  %v509_v24 = vrot.slane %v498_v10, 2  ;;  %v512_v25 = vrot.slane %v499_v11, 2  ;;  %v574_v33 = vrot.slane %v561_v12, 3 }
  0x26   : > { %v646_v34 = vrot.slane %v632_v18, 3  ;;  %v643_v37 = vrot.slane %v629_v27, 3  ;;  %v630_v38 = vmul.f32 %v621_v60, %v2055_v7  ;;  %v631_v39 = vmul.f32 %v625_v62, %v2052_v5 }
  0x27   : > { %v2129_v28 = vsel %vm435_vm1, %v509_v24, %v514_v57  ;;  %v2132_v29 = vsel %vm435_vm1, %v512_v25, %v516_v8  ;;  %v2135_v30 = vsel %vm435_vm1, %v508_v58, %v509_v24  ;;  %v2138_v31 = vsel %vm435_vm1, %v511_v9, %v512_v25  ;;  %v1837_v9 = vld [vmem:[%s2901_s2 + $0x2] ss:$8 sm:$0x3] }
  0x28   : > { %v640_v35 = vrot.slane %v628_v19, 3  ;;  %v568_v40 = vrot.slane %v559_v13, 3  ;;  %v641_v41 = vrot.slane %v630_v38, 3  ;;  %v644_v42 = vrot.slane %v631_v39, 3 }
  0x29   : > { %399 = vrot.lane.b32.xlu1 %v310_v20, %s1964_s25  ;;  %397 = vrot.lane.b32.xlu0 %v306_v14, %s1964_s25  ;;  %v2113_v14 = vsel %vm300_vm0, %v376_v63, %v381_v54  ;;  %v562_v20 = vld [vmem:[%s2034_s10 + $0x28] sm:$0x7]  ;;  %v575_v43 = vsel %vm567_vm2, %v569_v32, %v574_v33  ;;  %v572_v44 = vrot.slane %v2052_v5, 3  ;;  %v571_v50 = vrot.slane %v560_v23, 3 }
  0x2a   : > { %v633_v26 = vmul.f32 %v625_v62, %v562_v20  ;;  %v2149_v47 = vsel %vm567_vm2, %v641_v41, %v646_v34  ;;  %v2155_v7 = vsel %vm567_vm2, %v640_v35, %v641_v41  ;;  %v570_v49 = vsel %vm567_vm2, %v568_v40, %v569_v32  ;;  %v276_v62 = vld [vmem:[%s2902_s3] sm:$0x3]  ;;  %v1838_v32 = vld [vmem:[%s2901_s2 + $0x3] ss:$8 sm:$0x3] }
  0x2b   : > { %v573_v51 = vsel %vm567_vm2, %v571_v50, %v572_v44  ;;  %v2173_v54 = vand.u32 127, %v278_v6  ;;  %v339_v60 = vrot.slane %v330_v56, %v2067_v21  ;;  %v281_v13 = vrot.slane %v276_v62, %v2070_v22 }
  0x2c   : > { %v648_v36 = vrot.slane %v633_v26, 3  ;;  %v285_v18 = vrot.slane %v276_v62, %v2067_v21  ;;  %v412_v23 = vrot.slane %v1837_v9, %v2070_v22  ;;  %v416_v24 = vrot.slane %v1837_v9, %v2067_v21 }
  0x2d   : > { %452 = vrot.lane.b32.xlu1 %v443_v45, %s1963_s14  ;;  %450 = vrot.lane.b32.xlu0 %v438_v46, %s1963_s14  ;;  %vm325_vm3 = vcmp.lt.s32.totalorder %v2173_v54, 16  ;;  %vm401_vm4 = vcmp.lt.s32.totalorder %v2173_v54, 112 }
  0x2e   : > { %v2152_v48 = vsel %vm567_vm2, %v644_v42, %v648_v36 }
  0x31   : > { %456 = vrot.lane.b32.xlu1 %v445_v59, %s1963_s14  ;;  %454 = vrot.lane.b32.xlu0 %v441_v61, %s1963_s14 }
  0x35   : > { %528 = vrot.lane.b32.xlu1 %v443_v45, %s1964_s25  ;;  %526 = vrot.lane.b32.xlu0 %v438_v46, %s1964_s25  ;;  %v576_v45 = vrot.slane %v562_v20, 3  ;;  %v2158_v46 = vsel %vm567_vm2, %v643_v37, %v644_v42 }
  0x37   : > { %v577_v5 = vsel %vm567_vm2, %v572_v44, %v576_v45  ;;  %v472_v44 = vrot.slane %v1838_v32, %v2067_v21 }
  0x39   : > { %532 = vrot.lane.b32.xlu1 %v445_v59, %s1964_s25  ;;  %530 = vrot.lane.b32.xlu0 %v441_v61, %s1964_s25  ;;  %v335_v59 = vrot.slane %v330_v56, %v2070_v22 }
  0x3d   : > { %584 = vrot.lane.b32.xlu1 %v575_v43, %s1963_s14  ;;  %582 = vrot.lane.b32.xlu0 %v570_v49, %s1963_s14 }
  0x41   : > { %588 = vrot.lane.b32.xlu1 %v577_v5, %s1963_s14  ;;  %586 = vrot.lane.b32.xlu0 %v573_v51, %s1963_s14 }
  0x45   : > { %660 = vrot.lane.b32.xlu1 %v575_v43, %s1964_s25  ;;  %658 = vrot.lane.b32.xlu0 %v570_v49, %s1964_s25  ;;  %v468_v43 = vrot.slane %v1838_v32, %v2070_v22 }
  0x49   : > { %664 = vrot.lane.b32.xlu1 %v577_v5, %s1964_s25  ;;  %662 = vrot.lane.b32.xlu0 %v573_v51, %s1964_s25 }
  0x8f   : > { %v320_v52 = vpop.permute.xlu1 %319  ;;  %v316_v53 = vpop.permute.xlu0 %315 }
  0x90   : > { %v326_v63 = vsel %vm325_vm3, %v316_v53, %v320_v52  ;;  %v328_v4 = vsel %vm325_vm3, %v320_v52, %v316_v53 }
  0x91   : > { %v342_v19 = vmul.f32 %v335_v59, %v328_v4  ;;  %v343_v20 = vmul.f32 %v339_v60, %v326_v63 }
  0x93   : > { %v322_v55 = vpop.permute.xlu1 %321  ;;  %v318_v57 = vpop.permute.xlu0 %317  ;;  %v346_v38 = vadd.f32 %v342_v19, %v281_v13  ;;  %v347_v39 = vadd.f32 %v343_v20, %v285_v18 }
  0x94   : > { %v327_v61 = vsel %vm325_vm3, %v318_v57, %v322_v55  ;;  %v329_v6 = vsel %vm325_vm3, %v322_v55, %v318_v57 }
  0x95   : > { %v344_v10 = vmul.f32 %v335_v59, %v329_v6  ;;  %v345_v11 = vmul.f32 %v339_v60, %v327_v61  ;;  %v389_v52 = vadd.f32 %v2119_v16, %v346_v38  ;;  %v390_v53 = vadd.f32 %v2122_v17, %v347_v39 }
  0x97   : > { %v396_v58 = vpop.permute.xlu1 %395  ;;  %v394_v8 = vpop.permute.xlu0 %393  ;;  %v348_v33 = vadd.f32 %v344_v10, %v281_v13  ;;  %v349_v34 = vadd.f32 %v345_v11, %v285_v18  ;;  %v1840_v18 = vld [vmem:[%s2901_s2 + $0x5] ss:$8 sm:$0x3] }
  0x99   : > { %v391_v50 = vadd.f32 %v2113_v14, %v348_v33  ;;  %v392_v5 = vadd.f32 %v2116_v15, %v349_v34 }
  0x9b   : > { %v400_v12 = vpop.permute.xlu1 %399  ;;  %v398_v25 = vpop.permute.xlu0 %397 }
  0x9c   : > { %v403_v26 = vsel %vm401_vm4, %v396_v58, %v400_v12  ;;  %v405_v27 = vsel %vm401_vm4, %v400_v12, %v396_v58  ;;  %v402_v35 = vsel %vm401_vm4, %v394_v8, %v398_v25  ;;  %v404_v36 = vsel %vm401_vm4, %v398_v25, %v394_v8 }
  0x9d   : > { %v421_v40 = vmul.f32 %v412_v23, %v403_v26  ;;  %v422_v41 = vmul.f32 %v416_v24, %v405_v27  ;;  %v419_v45 = vmul.f32 %v412_v23, %v402_v35  ;;  %v420_v49 = vmul.f32 %v416_v24, %v404_v36 }
  0x9e   : > { %v544_v24 = vrot.slane %v1840_v18, %v2070_v22  ;;  %v548_v25 = vrot.slane %v1840_v18, %v2067_v21 }
  0x9f   : > { %v453_v37 = vpop.permute.xlu1 %452  ;;  %v451_v42 = vpop.permute.xlu0 %450  ;;  %v425_v57 = vadd.f32 %v421_v40, %v391_v50  ;;  %v426_v58 = vadd.f32 %v422_v41, %v392_v5  ;;  %v423_v6 = vadd.f32 %v419_v45, %v389_v52  ;;  %v424_v14 = vadd.f32 %v420_v49, %v390_v53  ;;  %v1843_v5 = vld [vmem:[%s2901_s2 + $0x10] ss:$8 sm:$0x3] }
  0xa3   : > { %v457_v51 = vpop.permute.xlu1 %456  ;;  %v455_v61 = vpop.permute.xlu0 %454 }
  0xa4   : > { %v459_v55 = vsel %vm325_vm3, %v453_v37, %v457_v51  ;;  %v461_v56 = vsel %vm325_vm3, %v457_v51, %v453_v37  ;;  %v458_v15 = vsel %vm325_vm3, %v451_v42, %v455_v61  ;;  %v460_v16 = vsel %vm325_vm3, %v455_v61, %v451_v42 }
  0xa5   : > { %v477_v59 = vmul.f32 %v468_v43, %v461_v56  ;;  %v478_v60 = vmul.f32 %v472_v44, %v459_v55  ;;  %v475_v63 = vmul.f32 %v468_v43, %v460_v16  ;;  %v476_v4 = vmul.f32 %v472_v44, %v458_v15 }
  0xa6   : > { %v676_v61 = vrot.slane %v1843_v5, %v2070_v22 }
  0xa7   : > { %v481_v17 = vadd.f32 %v477_v59, %v425_v57  ;;  %v482_v62 = vadd.f32 %v478_v60, %v426_v58  ;;  %v529_v8 = vpop.permute.xlu1 %528  ;;  %v479_v9 = vadd.f32 %v475_v63, %v423_v6  ;;  %v480_v10 = vadd.f32 %v476_v4, %v424_v14  ;;  %v527_v11 = vpop.permute.xlu0 %526 }
  0xa8   : > { %v680_v6 = vrot.slane %v1843_v5, %v2067_v21 }
  0xa9   : > { %v524_v12 = vadd.f32 %v2129_v28, %v481_v17  ;;  %v525_v13 = vadd.f32 %v2132_v29, %v482_v62  ;;  %v522_v20 = vadd.f32 %v2135_v30, %v479_v9  ;;  %v523_v23 = vadd.f32 %v2138_v31, %v480_v10  ;;  %v1841_v29 = vld [vmem:[%s2901_s2 + $0x6] ss:$8 sm:$0x3] }
  0xaa   : > { %v600_v36 = vrot.slane %v1841_v29, %v2070_v22  ;;  %v604_v37 = vrot.slane %v1841_v29, %v2067_v21 }
  0xab   : > { %v533_v19 = vpop.permute.xlu1 %532  ;;  %v531_v26 = vpop.permute.xlu0 %530 }
  0xac   : > { %v535_v27 = vsel %vm401_vm4, %v529_v8, %v533_v19  ;;  %v537_v28 = vsel %vm401_vm4, %v533_v19, %v529_v8  ;;  %v534_v30 = vsel %vm401_vm4, %v527_v11, %v531_v26  ;;  %v536_v31 = vsel %vm401_vm4, %v531_v26, %v527_v11 }
  0xad   : > { %v553_v33 = vmul.f32 %v544_v24, %v535_v27  ;;  %v554_v34 = vmul.f32 %v548_v25, %v537_v28  ;;  %v551_v38 = vmul.f32 %v544_v24, %v534_v30  ;;  %v552_v39 = vmul.f32 %v548_v25, %v536_v31 }
  0xaf   : > { %v585_v32 = vpop.permute.xlu1 %584  ;;  %v583_v35 = vpop.permute.xlu0 %582  ;;  %v557_v43 = vadd.f32 %v553_v33, %v524_v12  ;;  %v558_v44 = vadd.f32 %v554_v34, %v525_v13  ;;  %v555_v51 = vadd.f32 %v551_v38, %v522_v20  ;;  %v556_v52 = vadd.f32 %v552_v39, %v523_v23 }
  0xb3   : > { %v589_v40 = vpop.permute.xlu1 %588  ;;  %v587_v50 = vpop.permute.xlu0 %586 }
  0xb4   : > { %v591_v41 = vsel %vm325_vm3, %v585_v32, %v589_v40  ;;  %v593_v42 = vsel %vm325_vm3, %v589_v40, %v585_v32  ;;  %v590_v53 = vsel %vm325_vm3, %v583_v35, %v587_v50  ;;  %v592_v55 = vsel %vm325_vm3, %v587_v50, %v583_v35 }
  0xb5   : > { %v609_v45 = vmul.f32 %v600_v36, %v593_v42  ;;  %v610_v49 = vmul.f32 %v604_v37, %v591_v41  ;;  %v607_v58 = vmul.f32 %v600_v36, %v592_v55  ;;  %v608_v59 = vmul.f32 %v604_v37, %v590_v53 }
  0xb7   : > { %v613_v56 = vadd.f32 %v609_v45, %v557_v43  ;;  %v614_v57 = vadd.f32 %v610_v49, %v558_v44  ;;  %v661_v60 = vpop.permute.xlu1 %660  ;;  %v611_v14 = vadd.f32 %v607_v58, %v555_v51  ;;  %v612_v15 = vadd.f32 %v608_v59, %v556_v52  ;;  %v659_v16 = vpop.permute.xlu0 %658 }
  0xb9   : > { %v656_v17 = vadd.f32 %v2149_v47, %v613_v56  ;;  %v657_v62 = vadd.f32 %v2152_v48, %v614_v57  ;;  %v654_v4 = vadd.f32 %v2155_v7, %v611_v14  ;;  %v655_v8 = vadd.f32 %v2158_v46, %v612_v15 }
  0xbb   : > { %v665_v63 = vpop.permute.xlu1 %664  ;;  %v663_v11 = vpop.permute.xlu0 %662 }
  0xbc   : > { %v667_v9 = vsel %vm401_vm4, %v661_v60, %v665_v63  ;;  %v669_v21 = vsel %vm401_vm4, %v665_v63, %v661_v60  ;;  %v666_v47 = vsel %vm401_vm4, %v659_v16, %v663_v11  ;;  %v668_v48 = vsel %vm401_vm4, %v663_v11, %v659_v16 }
  0xbd   : > { %v685_v22 = vmul.f32 %v676_v61, %v667_v9  ;;  %v686_v10 = vmul.f32 %v680_v6, %v669_v21  ;;  %v683_v12 = vmul.f32 %v676_v61, %v666_v47  ;;  %v684_v13 = vmul.f32 %v680_v6, %v668_v48 }
  0xbf   : > { %v689_v7 = vadd.f32 %v685_v22, %v656_v17  ;;  %v690_v46 = vadd.f32 %v686_v10, %v657_v62  ;;  %v687_v20 = vadd.f32 %v683_v12, %v654_v4  ;;  %v688_v23 = vadd.f32 %v684_v13, %v655_v8 }
  0xc1   : > { %v693_v18 = vmul.f32 %v689_v7, %v2045_v2  ;;  %v694_v19 = vmul.f32 %v690_v46, %v2047_v3  ;;  %v691_v24 = vmul.f32 %v687_v20, %v2041_v0  ;;  %v692_v25 = vmul.f32 %v688_v23, %v2043_v1 }
  0xc3   : > { %697 = vst [vmem:[%s2039_s13 + $0x10] sm:$0xff] %v693_v18  ;;  %698 = vst [vmem:[%s2039_s13 + $0x18] sm:$0xff] %v694_v19 }
  0xc4   : > { %695 = vst [vmem:[%s2039_s13] sm:$0xff] %v691_v24  ;;  %696 = vst [vmem:[%s2039_s13 + $0x8] sm:$0xff] %v692_v25 }
  0xc5 PF: > { %p1844_p8 = scmp.ne.s32.totalorder %s1945_s15, 1 }
  0xc6   : > { %v2282_v54 = vld [vmem:[%s2034_s10 + $0x8] sm:$0xff] (!%p1844_p8)  ;;  %v2285_v26 = vld [vmem:[%s2034_s10] sm:$0xff] (!%p1844_p8)  ;;  %s1965_s24 = smov (!%p1844_p8), 32   ;;  %v2292_v27 = vld [vmem:[%s2034_s10 + $0x18] sm:$0xff] (!%p1844_p8)  ;;  %s1966_s15 = smov (!%p1844_p8), 16   ;;  %v706_v29 = vlaneseq (!%p1844_p8)  ;;  %vm891_vm5 = vcmask (!%p1844_p8), 1046528  }
  0xc7   : > { %702 = sbr.rel (%p1844_p8) target bundleno = 479 (0x1df), region = 44  ;;  %724 = vrot.lane.b32.xlu1 (!%p1844_p8), %v2282_v54, %s1965_s24  ;;  %720 = vrot.lane.b32.xlu0 (!%p1844_p8), %v2285_v26, %s1965_s24  ;;  %v2295_v28 = vld [vmem:[%s2034_s10 + $0x10] sm:$0xff] (!%p1844_p8)  ;;  %s1967_s25 = smov (!%p1844_p8), 112   ;;  %v1853_v31 = vld [vmem:[%s2901_s2 + $0x47] ss:$8 sm:$0x3] (!%p1844_p8) }
  0xc8   : > { %v707_v30 = vshrl.u32 (!%p1844_p8), %v706_v29, 7  ;;  %v883_v32 = vld [vmem:[%s2034_s10 + $0x20] sm:$0x1] (!%p1844_p8)  ;;  %v879_v34 = vld [vmem:[%s2034_s10] sm:$0xfe] (!%p1844_p8)  ;;  %s1968_s28 = smov (!%p1844_p8), 96  }
  0xc9   : > { %v893_v37 = vrot.slane (!%p1844_p8), %v2295_v28, 1  ;;  %v898_v38 = vrot.slane (!%p1844_p8), %v883_v32, 1  ;;  %v892_v40 = vrot.slane (!%p1844_p8), %v879_v34, 1  ;;  %v884_v41 = vld [vmem:[%s2034_s10 + $0x28] sm:$0x1] (!%p1844_p8)  ;;  %v896_v49 = vrot.slane (!%p1844_p8), %v2292_v27, 1 }
  0xca   : > { %v2322_v33 = vsub.s32 (!%p1844_p8), 0, %v707_v30  ;;  %v2325_v35 = vsub.s32 (!%p1844_p8), 1, %v707_v30  ;;  %v880_v42 = vld [vmem:[%s2034_s10 + $0x8] sm:$0xfe] (!%p1844_p8)  ;;  %v900_v51 = vrot.slane (!%p1844_p8), %v884_v41, 1  ;;  %v1091_v22 = vrot.slane (!%p1844_p8), %v2295_v28, 2 }
  0xcb   : > { %726 = vrot.lane.b32.xlu1 (!%p1844_p8), %v2292_v27, %s1965_s24  ;;  %722 = vrot.lane.b32.xlu0 (!%p1844_p8), %v2295_v28, %s1965_s24  ;;  %v899_v44 = vsel (!%p1844_p8), %vm891_vm5, %v893_v37, %v898_v38  ;;  %v894_v5 = vsel (!%p1844_p8), %vm891_vm5, %v892_v40, %v893_v37  ;;  %v895_v52 = vrot.slane (!%p1844_p8), %v880_v42, 1  ;;  %v1858_v4 = vld [vmem:[%s2901_s2 + $0x54] ss:$8 sm:$0x3] (!%p1844_p8)  ;;  %v1083_v8 = vld [vmem:[%s2034_s10 + $0x20] sm:$0x3] (!%p1844_p8) }
  0xcc   : > { %v978_v36 = vrot.slane (!%p1844_p8), %v1853_v31, %v2322_v33  ;;  %v982_v39 = vrot.slane (!%p1844_p8), %v1853_v31, %v2325_v35  ;;  %v901_v60 = vsel (!%p1844_p8), %vm891_vm5, %v896_v49, %v900_v51  ;;  %v1081_v9 = vld [vmem:[%s2034_s10] sm:$0xfc] (!%p1844_p8)  ;;  %v1176_v21 = vrot.slane (!%p1844_p8), %v1858_v4, %v2322_v33  ;;  %v1084_v48 = vld [vmem:[%s2034_s10 + $0x28] sm:$0x3] (!%p1844_p8)  ;;  %v1082_v7 = vld [vmem:[%s2034_s10 + $0x8] sm:$0xfc] (!%p1844_p8) }
  0xcd   : > { %v897_v61 = vsel (!%p1844_p8), %vm891_vm5, %v895_v52, %v896_v49  ;;  %v1096_v10 = vrot.slane (!%p1844_p8), %v1083_v8, 2  ;;  %v1180_v11 = vrot.slane (!%p1844_p8), %v1858_v4, %v2325_v35  ;;  %vm1089_vm6 = vcmask (!%p1844_p8), 1045504   ;;  %v2417_v49 = vld [vmem:[%s2034_s10 + $0x20] sm:$0x7] (!%p1844_p8) }
  0xce   : > { %v989_v43 = vmul.f32 %v978_v36, %v883_v32  ;;  %v985_v45 = vmul.f32 %v978_v36, %v879_v34  ;;  %v990_v50 = vmul.f32 %v982_v39, %v884_v41  ;;  %v986_v53 = vmul.f32 %v982_v39, %v880_v42 }
  0xcf   : > { %758 = vrot.lane.b32.xlu1 %v2295_v28, %s1966_s15  ;;  %756 = vrot.lane.b32.xlu0 %v2285_v26, %s1966_s15  ;;  %v987_v58 = vmul.f32 %v978_v36, %v2295_v28  ;;  %v988_v59 = vmul.f32 %v982_v39, %v2292_v27  ;;  %v1090_v47 = vrot.slane %v1081_v9, 2  ;;  %v1187_v46 = vmul.f32 %v1176_v21, %v1083_v8  ;;  %v1846_v8 = vld [vmem:[%s2901_s2 + $0x40] ss:$8 sm:$0x3] }
  0xd0   : > { %v1003_v55 = vrot.slane %v989_v43, 1  ;;  %v997_v56 = vrot.slane %v985_v45, 1  ;;  %v1005_v57 = vrot.slane %v990_v50, 1  ;;  %v1000_v6 = vrot.slane %v986_v53, 1  ;;  %v2420_v50 = vld [vmem:[%s2034_s10] sm:$0xf8] }
  0xd1   : > { %v998_v14 = vrot.slane %v987_v58, 1  ;;  %v1001_v15 = vrot.slane %v988_v59, 1  ;;  %v1097_v12 = vsel %vm1089_vm6, %v1091_v22, %v1096_v10  ;;  %v1183_v13 = vmul.f32 %v1176_v21, %v1081_v9  ;;  %v2428_v53 = vld [vmem:[%s2034_s10 + $0x28] sm:$0x7] }
  0xd2   : > { %v1094_v18 = vrot.slane %v2292_v27, 2  ;;  %v1188_v19 = vmul.f32 %v1180_v11, %v1084_v48  ;;  %v1092_v20 = vsel %vm1089_vm6, %v1090_v47, %v1091_v22  ;;  %v1098_v23 = vrot.slane %v1084_v48, 2  ;;  %v2469_v22 = vld [vmem:[%s2034_s10 + $0x20] sm:$0xf] }
  0xd3   : > { %762 = vrot.lane.b32.xlu1 %v2292_v27, %s1966_s15  ;;  %760 = vrot.lane.b32.xlu0 %v2282_v54, %s1966_s15  ;;  %v2352_v16 = vsel %vm891_vm5, %v998_v14, %v1003_v55  ;;  %v2355_v17 = vsel %vm891_vm5, %v1001_v15, %v1005_v57  ;;  %v2358_v62 = vsel %vm891_vm5, %v997_v56, %v998_v14  ;;  %v1093_v24 = vrot.slane %v1082_v7, 2  ;;  %v2431_v55 = vld [vmem:[%s2034_s10 + $0x8] sm:$0xf8] }
  0xd4   : > { %v2361_v63 = vsel %vm891_vm5, %v1000_v6, %v1001_v15  ;;  %v1184_v25 = vmul.f32 %v1180_v11, %v1082_v7  ;;  %v1201_v30 = vrot.slane %v1187_v46, 2  ;;  %v1195_v31 = vrot.slane %v1183_v13, 2  ;;  %v2474_v7 = vld [vmem:[%s2034_s10] sm:$0xf0] }
  0xd5   : > { %v1203_v32 = vrot.slane %v1188_v19, 2  ;;  %v1185_v34 = vmul.f32 %v1176_v21, %v2295_v28  ;;  %v1186_v36 = vmul.f32 %v1180_v11, %v2292_v27  ;;  %v1099_v37 = vsel %vm1089_vm6, %v1094_v18, %v1098_v23  ;;  %v1845_v21 = vld [vmem:[%s2902_s3 + $0x2] sm:$0x3] }
  0xd6   : > { %v1095_v38 = vsel %vm1089_vm6, %v1093_v24, %v1094_v18  ;;  %v1198_v39 = vrot.slane %v1184_v25, 2  ;;  %v1294_v51 = vrot.slane %v2417_v49, 3  ;;  %v1288_v52 = vrot.slane %v2420_v50, 3  ;;  %v1848_v46 = vld [vmem:[%s2901_s2 + $0x42] ss:$8 sm:$0x3] }
  0xd7   : > { %813 = vrot.lane.b32.xlu1 %v2295_v28, %s1967_s25  ;;  %811 = vrot.lane.b32.xlu0 %v2285_v26, %s1967_s25  ;;  %v1196_v40 = vrot.slane %v1185_v34, 2  ;;  %v1199_v41 = vrot.slane %v1186_v36, 2  ;;  %vm1287_vm7 = vcmask 1044480   ;;  %v1292_v56 = vrot.slane %v2292_v27, 3 }
  0xd8   : > { %v1296_v59 = vrot.slane %v2428_v53, 3  ;;  %v2451_v14 = vand.u32 127, %v706_v29  ;;  %v741_v10 = vrot.slane %v1846_v8, %v2322_v33  ;;  %v745_v11 = vrot.slane %v1846_v8, %v2325_v35 }
  0xd9   : > { %v2397_v42 = vsel %vm1089_vm6, %v1196_v40, %v1201_v30  ;;  %v2400_v43 = vsel %vm1089_vm6, %v1199_v41, %v1203_v32  ;;  %v2406_v45 = vsel %vm1089_vm6, %v1198_v39, %v1199_v41  ;;  %v709_v18 = vrot.slane %v1845_v21, %v2322_v33  ;;  %v2494_v30 = vld [vmem:[%s2034_s10 + $0x28] sm:$0xf] }
  0xda   : > { %vm730_vm8 = vcmp.lt.s32.totalorder %v2451_v14, 32  ;;  %v713_v19 = vrot.slane %v1845_v21, %v2325_v35  ;;  %vm1485_vm9 = vcmask 1043456   ;;  %v1487_v23 = vrot.slane %v2295_v28, 4 }
  0xdb   : > { %817 = vrot.lane.b32.xlu1 %v2292_v27, %s1967_s25  ;;  %815 = vrot.lane.b32.xlu0 %v2282_v54, %s1967_s25  ;;  %v1492_v24 = vrot.slane %v2469_v22, 4  ;;  %v1486_v25 = vrot.slane %v2474_v7, 4  ;;  %v796_v32 = vrot.slane %v1848_v46, %v2322_v33  ;;  %v800_v34 = vrot.slane %v1848_v46, %v2325_v35 }
  0xdc   : > { %vm764_vm10 = vcmp.lt.s32.totalorder %v2451_v14, 16  ;;  %vm819_vm11 = vcmp.lt.s32.totalorder %v2451_v14, 112  ;;  %vm853_vm12 = vcmp.lt.s32.totalorder %v2451_v14, 96 }
  0xdf   : > { %847 = vrot.lane.b32.xlu1 %v2295_v28, %s1968_s28  ;;  %845 = vrot.lane.b32.xlu0 %v2285_v26, %s1968_s28 }
  0xe3   : > { %851 = vrot.lane.b32.xlu1 %v2292_v27, %s1968_s28  ;;  %849 = vrot.lane.b32.xlu0 %v2282_v54, %s1968_s28 }
  0xe7   : > { %908 = vrot.lane.b32.xlu1 %v899_v44, %s1965_s24  ;;  %906 = vrot.lane.b32.xlu0 %v894_v5, %s1965_s24 }
  0xeb   : > { %912 = vrot.lane.b32.xlu1 %v901_v60, %s1965_s24  ;;  %910 = vrot.lane.b32.xlu0 %v897_v61, %s1965_s24 }
  0xef   : > { %941 = vrot.lane.b32.xlu1 %v899_v44, %s1966_s15  ;;  %939 = vrot.lane.b32.xlu0 %v894_v5, %s1966_s15 }
  0xf3   : > { %945 = vrot.lane.b32.xlu1 %v901_v60, %s1966_s15  ;;  %943 = vrot.lane.b32.xlu0 %v897_v61, %s1966_s15 }
  0xf7   : > { %1017 = vrot.lane.b32.xlu1 %v899_v44, %s1967_s25  ;;  %1015 = vrot.lane.b32.xlu0 %v894_v5, %s1967_s25 }
  0xfb   : > { %1021 = vrot.lane.b32.xlu1 %v901_v60, %s1967_s25  ;;  %1019 = vrot.lane.b32.xlu0 %v897_v61, %s1967_s25 }
  0xff   : > { %1050 = vrot.lane.b32.xlu1 %v899_v44, %s1968_s28  ;;  %1048 = vrot.lane.b32.xlu0 %v894_v5, %s1968_s28  ;;  %v2403_v44 = vsel %vm1089_vm6, %v1195_v31, %v1196_v40  ;;  %v1289_v5 = vrot.slane %v2295_v28, 3  ;;  %v2497_v31 = vld [vmem:[%s2034_s10 + $0x8] sm:$0xf0] }
 0x101   : > { %v1295_v57 = vsel %vm1287_vm7, %v1289_v5, %v1294_v51  ;;  %v1290_v58 = vsel %vm1287_vm7, %v1288_v52, %v1289_v5  ;;  %v1490_v52 = vrot.slane %v2292_v27, 4 }
 0x103   : > { %1054 = vrot.lane.b32.xlu1 %v901_v60, %s1968_s28  ;;  %1052 = vrot.lane.b32.xlu0 %v897_v61, %s1968_s28  ;;  %v1291_v60 = vrot.slane %v2431_v55, 3  ;;  %v1297_v61 = vsel %vm1287_vm7, %v1292_v56, %v1296_v59  ;;  %v2513_v59 = vsel %vm1485_vm9, %v1486_v25, %v1487_v23 }
 0x105   : > { %v1293_v6 = vsel %vm1287_vm7, %v1291_v60, %v1292_v56  ;;  %v1494_v56 = vrot.slane %v2494_v30, 4  ;;  %v803_v60 = vmul.f32 %v796_v32, %v2285_v26 }
 0x107   : > { %1106 = vrot.lane.b32.xlu1 %v1097_v12, %s1965_s24  ;;  %1104 = vrot.lane.b32.xlu0 %v1092_v20, %s1965_s24 }
 0x10b   : > { %1110 = vrot.lane.b32.xlu1 %v1099_v37, %s1965_s24  ;;  %1108 = vrot.lane.b32.xlu0 %v1095_v38, %s1965_s24 }
 0x10f   : > { %1139 = vrot.lane.b32.xlu1 %v1097_v12, %s1966_s15  ;;  %1137 = vrot.lane.b32.xlu0 %v1092_v20, %s1966_s15 }
 0x113   : > { %1143 = vrot.lane.b32.xlu1 %v1099_v37, %s1966_s15  ;;  %1141 = vrot.lane.b32.xlu0 %v1095_v38, %s1966_s15 }
 0x117   : > { %1215 = vrot.lane.b32.xlu1 %v1097_v12, %s1967_s25  ;;  %1213 = vrot.lane.b32.xlu0 %v1092_v20, %s1967_s25 }
 0x11b   : > { %1219 = vrot.lane.b32.xlu1 %v1099_v37, %s1967_s25  ;;  %1217 = vrot.lane.b32.xlu0 %v1095_v38, %s1967_s25 }
 0x11f   : > { %1248 = vrot.lane.b32.xlu1 %v1097_v12, %s1968_s28  ;;  %1246 = vrot.lane.b32.xlu0 %v1092_v20, %s1968_s28  ;;  %v1847_v20 = vld [vmem:[%s2901_s2 + $0x41] ss:$8 sm:$0x3] }
 0x120   : > { %v775_v5 = vrot.slane %v1847_v20, %v2322_v33  ;;  %v779_v51 = vrot.slane %v1847_v20, %v2325_v35  ;;  %v806_v20 = vmul.f32 %v800_v34, %v2292_v27 }
 0x123   : > { %1252 = vrot.lane.b32.xlu1 %v1099_v37, %s1968_s28  ;;  %1250 = vrot.lane.b32.xlu0 %v1095_v38, %s1968_s28 }
 0x127   : > { %1304 = vrot.lane.b32.xlu1 %v1295_v57, %s1965_s24  ;;  %1302 = vrot.lane.b32.xlu0 %v1290_v58, %s1965_s24 }
 0x12b   : > { %1308 = vrot.lane.b32.xlu1 %v1297_v61, %s1965_s24  ;;  %1306 = vrot.lane.b32.xlu0 %v1293_v6, %s1965_s24 }
 0x12f   : > { %1337 = vrot.lane.b32.xlu1 %v1295_v57, %s1966_s15  ;;  %1335 = vrot.lane.b32.xlu0 %v1290_v58, %s1966_s15 }
 0x133   : > { %1341 = vrot.lane.b32.xlu1 %v1297_v61, %s1966_s15  ;;  %1339 = vrot.lane.b32.xlu0 %v1293_v6, %s1966_s15 }
 0x137   : > { %1413 = vrot.lane.b32.xlu1 %v1295_v57, %s1967_s25  ;;  %1411 = vrot.lane.b32.xlu0 %v1290_v58, %s1967_s25 }
 0x139   : > { %v725_v15 = vpop.permute.xlu1 %724  ;;  %v721_v4 = vpop.permute.xlu0 %720 }
 0x13a   : > { %v731_v9 = vsel %vm730_vm8, %v721_v4, %v725_v15  ;;  %v733_v29 = vsel %vm730_vm8, %v725_v15, %v721_v4 }
 0x13b   : > { %1417 = vrot.lane.b32.xlu1 %v1297_v61, %s1967_s25  ;;  %1415 = vrot.lane.b32.xlu0 %v1293_v6, %s1967_s25  ;;  %v748_v36 = vmul.f32 %v741_v10, %v733_v29  ;;  %v749_v37 = vmul.f32 %v745_v11, %v731_v9 }
 0x13d   : > { %v727_v47 = vpop.permute.xlu1 %726  ;;  %v723_v48 = vpop.permute.xlu0 %722  ;;  %v752_v15 = vadd.f32 %v748_v36, %v709_v18 }
 0x13e   : > { %v732_v12 = vsel %vm730_vm8, %v723_v48, %v727_v47  ;;  %v734_v13 = vsel %vm730_vm8, %v727_v47, %v723_v48 }
 0x13f   : > { %1446 = vrot.lane.b32.xlu1 %v1295_v57, %s1968_s28  ;;  %1444 = vrot.lane.b32.xlu0 %v1290_v58, %s1968_s28  ;;  %v750_v38 = vmul.f32 %v741_v10, %v734_v13  ;;  %v751_v39 = vmul.f32 %v745_v11, %v732_v12  ;;  %v1489_v57 = vrot.slane %v2497_v31, 4  ;;  %v2510_v58 = vsel %vm1485_vm9, %v1487_v23, %v1492_v24 }
 0x140   : > { %v2530_v12 = vsel %vm1485_vm9, %v1490_v52, %v1494_v56 }
 0x141   : > { %v759_v40 = vpop.permute.xlu1 %758  ;;  %v757_v41 = vpop.permute.xlu0 %756  ;;  %v754_v4 = vadd.f32 %v750_v38, %v709_v18  ;;  %v755_v8 = vadd.f32 %v751_v39, %v713_v19  ;;  %v2533_v13 = vsel %vm1485_vm9, %v1489_v57, %v1490_v52  ;;  %v1849_v18 = vld [vmem:[%s2901_s2 + $0x43] ss:$8 sm:$0x3] }
 0x142   : > { %v830_v39 = vrot.slane %v1849_v18, %v2322_v33 }
 0x143   : > { %1450 = vrot.lane.b32.xlu1 %v1297_v61, %s1968_s28  ;;  %1448 = vrot.lane.b32.xlu0 %v1293_v6, %s1968_s28  ;;  %v804_v61 = vmul.f32 %v800_v34, %v2282_v54  ;;  %v753_v6 = vadd.f32 %v749_v37, %v713_v19  ;;  %v805_v19 = vmul.f32 %v796_v32, %v2295_v28 }
 0x145   : > { %v763_v9 = vpop.permute.xlu1 %762  ;;  %v761_v29 = vpop.permute.xlu0 %760 }
 0x146   : > { %v766_v21 = vsel %vm764_vm10, %v759_v40, %v763_v9  ;;  %v768_v10 = vsel %vm764_vm10, %v763_v9, %v759_v40  ;;  %v765_v11 = vsel %vm764_vm10, %v757_v41, %v761_v29  ;;  %v767_v26 = vsel %vm764_vm10, %v761_v29, %v757_v41  ;;  %v1850_v9 = vld [vmem:[%s2901_s2 + $0x44] ss:$8 sm:$0x3] }
 0x147   : > { %v784_v47 = vmul.f32 %v775_v5, %v768_v10  ;;  %v785_v54 = vmul.f32 %v779_v51, %v766_v21  ;;  %v782_v48 = vmul.f32 %v775_v5, %v767_v26  ;;  %v783_v46 = vmul.f32 %v779_v51, %v765_v11  ;;  %1502 = vrot.lane.b32.xlu1 %v2510_v58, %s1965_s24 }
 0x148   : > { %1500 = vrot.lane.b32.xlu0 %v2513_v59, %s1965_s24  ;;  %v834_v40 = vrot.slane %v1849_v18, %v2325_v35 }
 0x149   : > { %v788_v23 = vadd.f32 %v784_v47, %v754_v4  ;;  %v789_v24 = vadd.f32 %v785_v54, %v755_v8  ;;  %v786_v25 = vadd.f32 %v782_v48, %v752_v15  ;;  %v787_v36 = vadd.f32 %v783_v46, %v753_v6  ;;  %v814_v37 = vpop.permute.xlu1 %813  ;;  %v812_v38 = vpop.permute.xlu0 %811 }
 0x14a   : > { %v864_v54 = vrot.slane %v1850_v9, %v2322_v33  ;;  %v868_v48 = vrot.slane %v1850_v9, %v2325_v35 }
 0x14b   : > { %1506 = vrot.lane.b32.xlu1 %v2530_v12, %s1965_s24  ;;  %v807_v41 = vadd.f32 %v803_v60, %v786_v25  ;;  %v808_v5 = vadd.f32 %v804_v61, %v787_v36  ;;  %v809_v34 = vadd.f32 %v805_v19, %v788_v23  ;;  %v810_v51 = vadd.f32 %v806_v20, %v789_v24 }
 0x14c   : > { %1504 = vrot.lane.b32.xlu0 %v2533_v13, %s1965_s24 }
 0x14d   : > { %v818_v32 = vpop.permute.xlu1 %817  ;;  %v816_v52 = vpop.permute.xlu0 %815 }
 0x14e   : > { %v821_v56 = vsel %vm819_vm11, %v814_v37, %v818_v32  ;;  %v823_v57 = vsel %vm819_vm11, %v818_v32, %v814_v37  ;;  %v820_v15 = vsel %vm819_vm11, %v812_v38, %v816_v52  ;;  %v822_v60 = vsel %vm819_vm11, %v816_v52, %v812_v38 }
 0x14f   : > { %v839_v61 = vmul.f32 %v830_v39, %v821_v56  ;;  %v840_v6 = vmul.f32 %v834_v40, %v823_v57  ;;  %v837_v4 = vmul.f32 %v830_v39, %v820_v15  ;;  %v838_v8 = vmul.f32 %v834_v40, %v822_v60  ;;  %1535 = vrot.lane.b32.xlu1 %v2510_v58, %s1966_s15  ;;  %v1851_v39 = vld [vmem:[%s2901_s2 + $0x45] ss:$8 sm:$0x3] }
 0x150   : > { %1533 = vrot.lane.b32.xlu0 %v2513_v59, %s1966_s15  ;;  %v924_v52 = vrot.slane %v1851_v39, %v2322_v33  ;;  %v928_v56 = vrot.slane %v1851_v39, %v2325_v35 }
 0x151   : > { %v843_v29 = vadd.f32 %v839_v61, %v809_v34  ;;  %v844_v21 = vadd.f32 %v840_v6, %v810_v51  ;;  %v841_v10 = vadd.f32 %v837_v4, %v807_v41  ;;  %v842_v11 = vadd.f32 %v838_v8, %v808_v5  ;;  %v848_v26 = vpop.permute.xlu1 %847  ;;  %v846_v47 = vpop.permute.xlu0 %845 }
 0x153   : > { %1539 = vrot.lane.b32.xlu1 %v2530_v12, %s1966_s15 }
 0x154   : > { %1537 = vrot.lane.b32.xlu0 %v2533_v13, %s1966_s15 }
 0x155   : > { %v852_v46 = vpop.permute.xlu1 %851  ;;  %v850_v18 = vpop.permute.xlu0 %849 }
 0x156   : > { %v855_v19 = vsel %vm853_vm12, %v848_v26, %v852_v46  ;;  %v857_v20 = vsel %vm853_vm12, %v852_v46, %v848_v26  ;;  %v854_v23 = vsel %vm853_vm12, %v846_v47, %v850_v18  ;;  %v856_v24 = vsel %vm853_vm12, %v850_v18, %v846_v47 }
 0x157   : > { %v873_v25 = vmul.f32 %v864_v54, %v855_v19  ;;  %v874_v36 = vmul.f32 %v868_v48, %v857_v20  ;;  %v871_v37 = vmul.f32 %v864_v54, %v854_v23  ;;  %v872_v38 = vmul.f32 %v868_v48, %v856_v24  ;;  %1611 = vrot.lane.b32.xlu1 %v2510_v58, %s1967_s25 }
 0x158   : > { %1609 = vrot.lane.b32.xlu0 %v2513_v59, %s1967_s25 }
 0x159   : > { %v877_v40 = vadd.f32 %v873_v25, %v843_v29  ;;  %v878_v41 = vadd.f32 %v874_v36, %v844_v21  ;;  %v875_v5 = vadd.f32 %v871_v37, %v841_v10  ;;  %v876_v32 = vadd.f32 %v872_v38, %v842_v11  ;;  %v909_v34 = vpop.permute.xlu1 %908  ;;  %v907_v51 = vpop.permute.xlu0 %906  ;;  %v1852_v10 = vld [vmem:[%s2901_s2 + $0x46] ss:$8 sm:$0x3] }
 0x15a   : > { %v957_v18 = vrot.slane %v1852_v10, %v2322_v33 }
 0x15b   : > { %1615 = vrot.lane.b32.xlu1 %v2530_v12, %s1967_s25 }
 0x15c   : > { %1613 = vrot.lane.b32.xlu0 %v2533_v13, %s1967_s25 }
 0x15d   : > { %v913_v57 = vpop.permute.xlu1 %912  ;;  %v911_v15 = vpop.permute.xlu0 %910 }
 0x15e   : > { %v915_v60 = vsel %vm730_vm8, %v909_v34, %v913_v57  ;;  %v917_v61 = vsel %vm730_vm8, %v913_v57, %v909_v34  ;;  %v914_v6 = vsel %vm730_vm8, %v907_v51, %v911_v15  ;;  %v916_v4 = vsel %vm730_vm8, %v911_v15, %v907_v51 }
 0x15f   : > { %v933_v8 = vmul.f32 %v924_v52, %v917_v61  ;;  %v934_v9 = vmul.f32 %v928_v56, %v915_v60  ;;  %v931_v29 = vmul.f32 %v924_v52, %v916_v4  ;;  %v932_v21 = vmul.f32 %v928_v56, %v914_v6  ;;  %1644 = vrot.lane.b32.xlu1 %v2510_v58, %s1968_s28 }
 0x160   : > { %1642 = vrot.lane.b32.xlu0 %v2513_v59, %s1968_s28  ;;  %v961_v58 = vrot.slane %v1852_v10, %v2325_v35 }
 0x161   : > { %v937_v11 = vadd.f32 %v933_v8, %v877_v40  ;;  %v938_v26 = vadd.f32 %v934_v9, %v878_v41  ;;  %v935_v47 = vadd.f32 %v931_v29, %v875_v5  ;;  %v936_v54 = vadd.f32 %v932_v21, %v876_v32  ;;  %v942_v48 = vpop.permute.xlu1 %941  ;;  %v940_v46 = vpop.permute.xlu0 %939 }
 0x163   : > { %1648 = vrot.lane.b32.xlu1 %v2530_v12, %s1968_s28 }
 0x164   : > { %1646 = vrot.lane.b32.xlu0 %v2533_v13, %s1968_s28  ;;  %v1854_v13 = vld [vmem:[%s2901_s2 + $0x50] ss:$8 sm:$0x3] }
 0x165   : > { %v946_v59 = vpop.permute.xlu1 %945  ;;  %v944_v19 = vpop.permute.xlu0 %943  ;;  %v1033_v51 = vrot.slane %v1854_v13, %v2322_v33  ;;  %v1037_v52 = vrot.slane %v1854_v13, %v2325_v35 }
 0x166   : > { %v948_v20 = vsel %vm764_vm10, %v942_v48, %v946_v59  ;;  %v950_v23 = vsel %vm764_vm10, %v946_v59, %v942_v48  ;;  %v947_v24 = vsel %vm764_vm10, %v940_v46, %v944_v19  ;;  %v949_v12 = vsel %vm764_vm10, %v944_v19, %v940_v46 }
 0x167   : > { %v966_v25 = vmul.f32 %v957_v18, %v950_v23  ;;  %v967_v36 = vmul.f32 %v961_v58, %v948_v20  ;;  %v964_v37 = vmul.f32 %v957_v18, %v949_v12  ;;  %v965_v38 = vmul.f32 %v961_v58, %v947_v24 }
 0x169   : > { %v970_v39 = vadd.f32 %v966_v25, %v937_v11  ;;  %v971_v40 = vadd.f32 %v967_v36, %v938_v26  ;;  %v968_v41 = vadd.f32 %v964_v37, %v935_v47  ;;  %v969_v5 = vadd.f32 %v965_v38, %v936_v54  ;;  %v1018_v32 = vpop.permute.xlu1 %1017  ;;  %v1016_v34 = vpop.permute.xlu0 %1015  ;;  %v1856_v38 = vld [vmem:[%s2901_s2 + $0x52] ss:$8 sm:$0x3] }
 0x16b   : > { %v1013_v56 = vadd.f32 %v2352_v16, %v970_v39  ;;  %v1014_v57 = vadd.f32 %v2355_v17, %v971_v40  ;;  %v1011_v15 = vadd.f32 %v2358_v62, %v968_v41  ;;  %v1012_v60 = vadd.f32 %v2361_v63, %v969_v5  ;;  %v1855_v63 = vld [vmem:[%s2901_s2 + $0x51] ss:$8 sm:$0x3] }
 0x16c   : > { %v1066_v46 = vrot.slane %v1855_v63, %v2322_v33  ;;  %v1070_v18 = vrot.slane %v1855_v63, %v2325_v35 }
 0x16d   : > { %v1022_v61 = vpop.permute.xlu1 %1021  ;;  %v1020_v6 = vpop.permute.xlu0 %1019 }
 0x16e   : > { %v1024_v4 = vsel %vm819_vm11, %v1018_v32, %v1022_v61  ;;  %v1026_v8 = vsel %vm819_vm11, %v1022_v61, %v1018_v32  ;;  %v1023_v9 = vsel %vm819_vm11, %v1016_v34, %v1020_v6  ;;  %v1025_v16 = vsel %vm819_vm11, %v1020_v6, %v1016_v34 }
 0x16f   : > { %v1042_v29 = vmul.f32 %v1033_v51, %v1024_v4  ;;  %v1043_v17 = vmul.f32 %v1037_v52, %v1026_v8  ;;  %v1040_v21 = vmul.f32 %v1033_v51, %v1023_v9  ;;  %v1041_v62 = vmul.f32 %v1037_v52, %v1025_v16  ;;  %v1857_v16 = vld [vmem:[%s2901_s2 + $0x53] ss:$8 sm:$0x3] }
 0x170   : > { %v1122_v34 = vrot.slane %v1856_v38, %v2322_v33  ;;  %v1126_v51 = vrot.slane %v1856_v38, %v2325_v35 }
 0x171   : > { %v1046_v10 = vadd.f32 %v1042_v29, %v1013_v56  ;;  %v1047_v11 = vadd.f32 %v1043_v17, %v1014_v57  ;;  %v1044_v26 = vadd.f32 %v1040_v21, %v1011_v15  ;;  %v1045_v47 = vadd.f32 %v1041_v62, %v1012_v60  ;;  %v1051_v54 = vpop.permute.xlu1 %1050  ;;  %v1049_v48 = vpop.permute.xlu0 %1048 }
 0x175   : > { %v1055_v58 = vpop.permute.xlu1 %1054  ;;  %v1053_v59 = vpop.permute.xlu0 %1052 }
 0x176   : > { %v1057_v19 = vsel %vm853_vm12, %v1051_v54, %v1055_v58  ;;  %v1059_v20 = vsel %vm853_vm12, %v1055_v58, %v1051_v54  ;;  %v1056_v23 = vsel %vm853_vm12, %v1049_v48, %v1053_v59  ;;  %v1058_v24 = vsel %vm853_vm12, %v1053_v59, %v1049_v48 }
 0x177   : > { %v1075_v12 = vmul.f32 %v1066_v46, %v1057_v19  ;;  %v1076_v25 = vmul.f32 %v1070_v18, %v1059_v20  ;;  %v1073_v36 = vmul.f32 %v1066_v46, %v1056_v23  ;;  %v1074_v37 = vmul.f32 %v1070_v18, %v1058_v24 }
 0x179   : > { %v1079_v13 = vadd.f32 %v1075_v12, %v1046_v10  ;;  %v1080_v39 = vadd.f32 %v1076_v25, %v1047_v11  ;;  %v1077_v40 = vadd.f32 %v1073_v36, %v1044_v26  ;;  %v1078_v41 = vadd.f32 %v1074_v37, %v1045_v47  ;;  %v1107_v5 = vpop.permute.xlu1 %1106  ;;  %v1105_v32 = vpop.permute.xlu0 %1104 }
 0x17a   : > { %v1155_v11 = vrot.slane %v1857_v16, %v2322_v33  ;;  %v1159_v26 = vrot.slane %v1857_v16, %v2325_v35 }
 0x17d   : > { %v1111_v52 = vpop.permute.xlu1 %1110  ;;  %v1109_v56 = vpop.permute.xlu0 %1108 }
 0x17e   : > { %v1113_v57 = vsel %vm730_vm8, %v1107_v5, %v1111_v52  ;;  %v1115_v15 = vsel %vm730_vm8, %v1111_v52, %v1107_v5  ;;  %v1112_v60 = vsel %vm730_vm8, %v1105_v32, %v1109_v56  ;;  %v1114_v61 = vsel %vm730_vm8, %v1109_v56, %v1105_v32  ;;  %v1863_v52 = vld [vmem:[%s2901_s2 + $0x61] ss:$8 sm:$0x3]  ;;  %v1859_v56 = vld [vmem:[%s2901_s2 + $0x55] ss:$8 sm:$0x3] }
 0x17f   : > { %v1131_v6 = vmul.f32 %v1122_v34, %v1115_v15  ;;  %v1132_v4 = vmul.f32 %v1126_v51, %v1113_v57  ;;  %v1129_v8 = vmul.f32 %v1122_v34, %v1114_v61  ;;  %v1130_v9 = vmul.f32 %v1126_v51, %v1112_v60  ;;  %v1860_v60 = vld [vmem:[%s2901_s2 + $0x56] ss:$8 sm:$0x3] }
 0x180   : > { %v1235_v15 = vrot.slane %v1859_v56, %v2325_v35 }
 0x181   : > { %v1135_v29 = vadd.f32 %v1131_v6, %v1079_v13  ;;  %v1136_v17 = vadd.f32 %v1132_v4, %v1080_v39  ;;  %v1133_v21 = vadd.f32 %v1129_v8, %v1077_v40  ;;  %v1134_v62 = vadd.f32 %v1130_v9, %v1078_v41  ;;  %v1140_v63 = vpop.permute.xlu1 %1139  ;;  %v1138_v10 = vpop.permute.xlu0 %1137 }
 0x185   : > { %v1144_v47 = vpop.permute.xlu1 %1143  ;;  %v1142_v54 = vpop.permute.xlu0 %1141 }
 0x186   : > { %v1146_v48 = vsel %vm764_vm10, %v1140_v63, %v1144_v47  ;;  %v1148_v46 = vsel %vm764_vm10, %v1144_v47, %v1140_v63  ;;  %v1145_v18 = vsel %vm764_vm10, %v1138_v10, %v1142_v54  ;;  %v1147_v58 = vsel %vm764_vm10, %v1142_v54, %v1138_v10 }
 0x187   : > { %v1164_v59 = vmul.f32 %v1155_v11, %v1148_v46  ;;  %v1165_v19 = vmul.f32 %v1159_v26, %v1146_v48  ;;  %v1162_v20 = vmul.f32 %v1155_v11, %v1147_v58  ;;  %v1163_v23 = vmul.f32 %v1159_v26, %v1145_v18 }
 0x188   : > { %v1264_v63 = vrot.slane %v1860_v60, %v2322_v33  ;;  %v1268_v10 = vrot.slane %v1860_v60, %v2325_v35 }
 0x189   : > { %v1168_v24 = vadd.f32 %v1164_v59, %v1135_v29  ;;  %v1169_v12 = vadd.f32 %v1165_v19, %v1136_v17  ;;  %v1166_v25 = vadd.f32 %v1162_v20, %v1133_v21  ;;  %v1167_v36 = vadd.f32 %v1163_v23, %v1134_v62  ;;  %v1216_v37 = vpop.permute.xlu1 %1215  ;;  %v1214_v38 = vpop.permute.xlu0 %1213 }
 0x18b   : > { %v1211_v13 = vadd.f32 %v2397_v42, %v1168_v24  ;;  %v1212_v39 = vadd.f32 %v2400_v43, %v1169_v12  ;;  %v1209_v40 = vadd.f32 %v2403_v44, %v1166_v25  ;;  %v1210_v41 = vadd.f32 %v2406_v45, %v1167_v36 }
 0x18c   : > { %v1374_v42 = vrot.slane %v1863_v52, %v2322_v33  ;;  %v1378_v44 = vrot.slane %v1863_v52, %v2325_v35  ;;  %v1231_v45 = vrot.slane %v1859_v56, %v2322_v33 }
 0x18d   : > { %v1220_v5 = vpop.permute.xlu1 %1219  ;;  %v1218_v32 = vpop.permute.xlu0 %1217 }
 0x18e   : > { %v1222_v61 = vsel %vm819_vm11, %v1216_v37, %v1220_v5  ;;  %v1224_v6 = vsel %vm819_vm11, %v1220_v5, %v1216_v37  ;;  %v1221_v4 = vsel %vm819_vm11, %v1214_v38, %v1218_v32  ;;  %v1223_v8 = vsel %vm819_vm11, %v1218_v32, %v1214_v38 }
 0x18f   : > { %v2701_v9 = vmul.f32 %v1374_v42, %v2417_v49  ;;  %v2704_v16 = vmul.f32 %v1374_v42, %v2420_v50  ;;  %v2707_v21 = vmul.f32 %v1378_v44, %v2428_v53  ;;  %v2710_v62 = vmul.f32 %v1378_v44, %v2431_v55  ;;  %v1861_v49 = vld [vmem:[%s2901_s2 + $0x57] ss:$8 sm:$0x3] }
 0x190   : > { %v1240_v11 = vmul.f32 %v1231_v45, %v1222_v61  ;;  %v1241_v26 = vmul.f32 %v1235_v15, %v1224_v6  ;;  %v1238_v50 = vmul.f32 %v1231_v45, %v1221_v4  ;;  %v1239_v47 = vmul.f32 %v1235_v15, %v1223_v8 }
 0x191   : > { %v1249_v34 = vpop.permute.xlu1 %1248  ;;  %v1247_v51 = vpop.permute.xlu0 %1246  ;;  %v1320_v18 = vrot.slane %v1861_v49, %v2322_v33  ;;  %v1324_v58 = vrot.slane %v1861_v49, %v2325_v35  ;;  %v1383_v19 = vmul.f32 %v1374_v42, %v2295_v28  ;;  %v1384_v20 = vmul.f32 %v1378_v44, %v2292_v27  ;;  %v1862_v27 = vld [vmem:[%s2901_s2 + $0x60] ss:$8 sm:$0x3] }
 0x192   : > { %v1244_v28 = vadd.f32 %v1240_v11, %v1211_v13  ;;  %v1245_v32 = vadd.f32 %v1241_v26, %v1212_v39  ;;  %v1399_v45 = vrot.slane %v2701_v9, 3  ;;  %v1393_v15 = vrot.slane %v2704_v16, 3 }
 0x193   : > { %v1353_v60 = vrot.slane %v1862_v27, %v2322_v33  ;;  %v1357_v61 = vrot.slane %v1862_v27, %v2325_v35  ;;  %v1394_v8 = vrot.slane %v1383_v19, 3  ;;  %v1868_v27 = vld [vmem:[%s2901_s2 + $0x66] ss:$8 sm:$0x3] }
 0x195   : > { %v1253_v57 = vpop.permute.xlu1 %1252  ;;  %v1251_v43 = vpop.permute.xlu0 %1250 }
 0x196   : > { %v1255_v54 = vsel %vm853_vm12, %v1249_v34, %v1253_v57  ;;  %v1257_v53 = vsel %vm853_vm12, %v1253_v57, %v1249_v34  ;;  %v1254_v55 = vsel %vm853_vm12, %v1247_v51, %v1251_v43  ;;  %v1256_v48 = vsel %vm853_vm12, %v1251_v43, %v1247_v51 }
 0x197   : > { %v1273_v36 = vmul.f32 %v1264_v63, %v1255_v54  ;;  %v1274_v37 = vmul.f32 %v1268_v10, %v1257_v53  ;;  %v1271_v38 = vmul.f32 %v1264_v63, %v1254_v55  ;;  %v1272_v5 = vmul.f32 %v1268_v10, %v1256_v48 }
 0x198   : > { %v1242_v34 = vadd.f32 %v1238_v50, %v1209_v40  ;;  %v1243_v51 = vadd.f32 %v1239_v47, %v1210_v41  ;;  %v1401_v40 = vrot.slane %v2707_v21, 3  ;;  %v1396_v41 = vrot.slane %v2710_v62, 3 }
 0x199   : > { %v1305_v29 = vpop.permute.xlu1 %1304  ;;  %v1303_v17 = vpop.permute.xlu0 %1302  ;;  %v1277_v6 = vadd.f32 %v1273_v36, %v1244_v28  ;;  %v1278_v4 = vadd.f32 %v1274_v37, %v1245_v32  ;;  %v1400_v55 = vsel %vm1287_vm7, %v1394_v8, %v1399_v45  ;;  %v1572_v28 = vrot.slane %v1868_v27, %v2322_v33  ;;  %v1864_v45 = vld [vmem:[%s2901_s2 + $0x62] ss:$8 sm:$0x3] }
 0x19a   : > { %v1275_v13 = vadd.f32 %v1271_v38, %v1242_v34  ;;  %v1276_v39 = vadd.f32 %v1272_v5, %v1243_v51  ;;  %v1576_v51 = vrot.slane %v1868_v27, %v2325_v35 }
 0x19d   : > { %v1309_v46 = vpop.permute.xlu1 %1308  ;;  %v1307_v59 = vpop.permute.xlu0 %1306 }
 0x19e   : > { %v1311_v23 = vsel %vm730_vm8, %v1305_v29, %v1309_v46  ;;  %v1313_v24 = vsel %vm730_vm8, %v1309_v46, %v1305_v29  ;;  %v1310_v12 = vsel %vm730_vm8, %v1303_v17, %v1307_v59  ;;  %v1312_v25 = vsel %vm730_vm8, %v1307_v59, %v1303_v17 }
 0x19f   : > { %v1329_v52 = vmul.f32 %v1320_v18, %v1313_v24  ;;  %v1330_v56 = vmul.f32 %v1324_v58, %v1311_v23  ;;  %v1327_v42 = vmul.f32 %v1320_v18, %v1312_v25  ;;  %v1328_v57 = vmul.f32 %v1324_v58, %v1310_v12 }
 0x1a0   : > { %v1397_v29 = vrot.slane %v1384_v20, 3  ;;  %v1395_v46 = vsel %vm1287_vm7, %v1393_v15, %v1394_v8 }
 0x1a1   : > { %v1338_v43 = vpop.permute.xlu1 %1337  ;;  %v1336_v44 = vpop.permute.xlu0 %1335  ;;  %v1333_v17 = vadd.f32 %v1329_v52, %v1277_v6  ;;  %v1334_v63 = vadd.f32 %v1330_v56, %v1278_v4  ;;  %v1331_v10 = vadd.f32 %v1327_v42, %v1275_v13  ;;  %v1332_v9 = vadd.f32 %v1328_v57, %v1276_v39  ;;  %v1866_v13 = vld [vmem:[%s2901_s2 + $0x64] ss:$8 sm:$0x3] }
 0x1a2   : > { %v1402_v48 = vsel %vm1287_vm7, %v1397_v29, %v1401_v40  ;;  %v1398_v18 = vsel %vm1287_vm7, %v1396_v41, %v1397_v29  ;;  %v2768_v52 = vmul.f32 %v1572_v28, %v2469_v22  ;;  %v2771_v56 = vmul.f32 %v1572_v28, %v2474_v7  ;;  %v1865_v22 = vld [vmem:[%s2901_s2 + $0x63] ss:$8 sm:$0x3] }
 0x1a3   : > { %v1433_v6 = vrot.slane %v1864_v45, %v2325_v35  ;;  %v1462_v41 = vrot.slane %v1865_v22, %v2322_v33  ;;  %v1466_v8 = vrot.slane %v1865_v22, %v2325_v35 }
 0x1a4   : > { %v1597_v7 = vrot.slane %v2768_v52, 4  ;;  %v1591_v15 = vrot.slane %v2771_v56, 4 }
 0x1a5   : > { %v1342_v49 = vpop.permute.xlu1 %1341  ;;  %v1340_v16 = vpop.permute.xlu0 %1339 }
 0x1a6   : > { %v1344_v11 = vsel %vm764_vm10, %v1338_v43, %v1342_v49  ;;  %v1346_v26 = vsel %vm764_vm10, %v1342_v49, %v1338_v43  ;;  %v1343_v50 = vsel %vm764_vm10, %v1336_v44, %v1340_v16  ;;  %v1345_v21 = vsel %vm764_vm10, %v1340_v16, %v1336_v44 }
 0x1a7   : > { %v1362_v62 = vmul.f32 %v1353_v60, %v1346_v26  ;;  %v1363_v47 = vmul.f32 %v1357_v61, %v1344_v11  ;;  %v1360_v54 = vmul.f32 %v1353_v60, %v1345_v21  ;;  %v1361_v53 = vmul.f32 %v1357_v61, %v1343_v50 }
 0x1a8   : > { %v2774_v43 = vmul.f32 %v1576_v51, %v2494_v30  ;;  %v2777_v44 = vmul.f32 %v1576_v51, %v2497_v31  ;;  %v1429_v61 = vrot.slane %v1864_v45, %v2322_v33  ;;  %v1518_v50 = vrot.slane %v1866_v13, %v2322_v33 }
 0x1a9   : > { %v1366_v58 = vadd.f32 %v1362_v62, %v1333_v17  ;;  %v1367_v59 = vadd.f32 %v1363_v47, %v1334_v63  ;;  %v1364_v19 = vadd.f32 %v1360_v54, %v1331_v10  ;;  %v1365_v20 = vadd.f32 %v1361_v53, %v1332_v9  ;;  %v1414_v23 = vpop.permute.xlu1 %1413  ;;  %v1412_v24 = vpop.permute.xlu0 %1411  ;;  %v1921_v63 = vld [vmem:[%s2034_s10 + $0x10] sm:$0xff]  ;;  %v1922_v9 = vld [vmem:[%s2034_s10 + $0x18] sm:$0xff] }
 0x1aa   : > { %v1599_v30 = vrot.slane %v2774_v43, 4  ;;  %v1594_v31 = vrot.slane %v2777_v44, 4  ;;  %v2805_v10 = vmul.f32 %v1921_v63, %v1572_v28  ;;  %v1582_v49 = vmul.f32 %v1922_v9, %v1576_v51 }
 0x1ab   : > { %v1409_v12 = vadd.f32 %v1400_v55, %v1366_v58  ;;  %v1410_v25 = vadd.f32 %v1402_v48, %v1367_v59  ;;  %v2758_v36 = vadd.f32 %v1395_v46, %v1364_v19  ;;  %v2760_v37 = vadd.f32 %v1398_v18, %v1365_v20  ;;  %v1867_v20 = vld [vmem:[%s2901_s2 + $0x65] ss:$8 sm:$0x3] }
 0x1ac   : > { %v1522_v21 = vrot.slane %v1866_v13, %v2325_v35  ;;  %v1551_v22 = vrot.slane %v1867_v20, %v2322_v33 }
 0x1ad   : > { %v1418_v38 = vpop.permute.xlu1 %1417  ;;  %v1416_v5 = vpop.permute.xlu0 %1415 }
 0x1ae   : > { %v1420_v39 = vsel %vm819_vm11, %v1414_v23, %v1418_v38  ;;  %v1422_v40 = vsel %vm819_vm11, %v1418_v38, %v1414_v23  ;;  %v1419_v29 = vsel %vm819_vm11, %v1412_v24, %v1416_v5  ;;  %v1421_v17 = vsel %vm819_vm11, %v1416_v5, %v1412_v24 }
 0x1af   : > { %v1438_v62 = vmul.f32 %v1429_v61, %v1420_v39  ;;  %v1439_v47 = vmul.f32 %v1433_v6, %v1422_v40  ;;  %v1436_v48 = vmul.f32 %v1429_v61, %v1419_v29  ;;  %v1437_v46 = vmul.f32 %v1433_v6, %v1421_v17 }
 0x1b0   : > { %v1592_v23 = vrot.slane %v2805_v10, 4  ;;  %v1595_v24 = vrot.slane %v1582_v49, 4 }
 0x1b1   : > { %v1447_v32 = vpop.permute.xlu1 %1446  ;;  %v1445_v34 = vpop.permute.xlu0 %1444  ;;  %v1443_v51 = vadd.f32 %v1439_v47, %v1410_v25  ;;  %v1440_v43 = vadd.f32 %v1436_v48, %v2758_v36  ;;  %v1441_v45 = vadd.f32 %v1437_v46, %v2760_v37  ;;  %v1869_v48 = vld [vmem:[%s2901_s2 + $0x67] ss:$8 sm:$0x3] }
 0x1b2   : > { %v1600_v25 = vsel %vm1485_vm9, %v1595_v24, %v1599_v30  ;;  %v1596_v47 = vsel %vm1485_vm9, %v1594_v31, %v1595_v24  ;;  %v1627_v56 = vrot.slane %v1869_v48, %v2322_v33 }
 0x1b5   : > { %v1451_v42 = vpop.permute.xlu1 %1450  ;;  %v1449_v57 = vpop.permute.xlu0 %1448 }
 0x1b6   : > { %v1453_v16 = vsel %vm853_vm12, %v1447_v32, %v1451_v42  ;;  %v1455_v11 = vsel %vm853_vm12, %v1451_v42, %v1447_v32  ;;  %v1452_v54 = vsel %vm853_vm12, %v1445_v34, %v1449_v57  ;;  %v1454_v53 = vsel %vm853_vm12, %v1449_v57, %v1445_v34 }
 0x1b7   : > { %v1471_v59 = vmul.f32 %v1462_v41, %v1453_v16  ;;  %v1472_v19 = vmul.f32 %v1466_v8, %v1455_v11  ;;  %v1469_v38 = vmul.f32 %v1462_v41, %v1452_v54  ;;  %v1470_v5 = vmul.f32 %v1466_v8, %v1454_v53 }
 0x1b8   : > { %v1442_v34 = vadd.f32 %v1438_v62, %v1409_v12  ;;  %v1598_v12 = vsel %vm1485_vm9, %v1592_v23, %v1597_v7  ;;  %v1593_v62 = vsel %vm1485_vm9, %v1591_v15, %v1592_v23  ;;  %v1631_v15 = vrot.slane %v1869_v48, %v2325_v35  ;;  %v1870_v23 = vld [vmem:[%s2901_s2 + $0x70] ss:$8 sm:$0x3] }
 0x1b9   : > { %v1503_v60 = vpop.permute.xlu1 %1502  ;;  %v1476_v6 = vadd.f32 %v1472_v19, %v1443_v51  ;;  %v1473_v40 = vadd.f32 %v1469_v38, %v1440_v43  ;;  %v1664_v51 = vrot.slane %v1870_v23, %v2325_v35 }
 0x1ba   : > { %v1501_v4 = vpop.permute.xlu0 %1500  ;;  %v1475_v61 = vadd.f32 %v1471_v59, %v1442_v34  ;;  %v1660_v34 = vrot.slane %v1870_v23, %v2322_v33 }
 0x1bd   : > { %v1507_v26 = vpop.permute.xlu1 %1506 }
 0x1be   : > { %v1505_v55 = vpop.permute.xlu0 %1504  ;;  %v1509_v18 = vsel %vm730_vm8, %v1503_v60, %v1507_v26  ;;  %v1511_v58 = vsel %vm730_vm8, %v1507_v26, %v1503_v60  ;;  %v1555_v60 = vrot.slane %v1867_v20, %v2325_v35 }
 0x1bf   : > { %v1508_v27 = vsel %vm730_vm8, %v1501_v4, %v1505_v55  ;;  %v1510_v28 = vsel %vm730_vm8, %v1505_v55, %v1501_v4  ;;  %v1527_v52 = vmul.f32 %v1518_v50, %v1511_v58  ;;  %v1528_v42 = vmul.f32 %v1522_v21, %v1509_v18 }
 0x1c0   : > { %v1525_v13 = vmul.f32 %v1518_v50, %v1510_v28  ;;  %v1526_v39 = vmul.f32 %v1522_v21, %v1508_v27  ;;  %v1474_v4 = vadd.f32 %v1470_v5, %v1441_v45 }
 0x1c1   : > { %v1536_v32 = vpop.permute.xlu1 %1535  ;;  %v1531_v8 = vadd.f32 %v1527_v52, %v1475_v61  ;;  %v1532_v29 = vadd.f32 %v1528_v42, %v1476_v6 }
 0x1c2   : > { %v1534_v57 = vpop.permute.xlu0 %1533  ;;  %v1529_v7 = vadd.f32 %v1525_v13, %v1473_v40  ;;  %v1530_v16 = vadd.f32 %v1526_v39, %v1474_v4 }
 0x1c5   : > { %v1540_v41 = vpop.permute.xlu1 %1539 }
 0x1c6   : > { %v1542_v36 = vsel %vm764_vm10, %v1536_v32, %v1540_v41  ;;  %v1544_v37 = vsel %vm764_vm10, %v1540_v41, %v1536_v32  ;;  %v1538_v17 = vpop.permute.xlu0 %1537 }
 0x1c7   : > { %v1560_v63 = vmul.f32 %v1551_v22, %v1544_v37  ;;  %v1561_v10 = vmul.f32 %v1555_v60, %v1542_v36  ;;  %v1541_v9 = vsel %vm764_vm10, %v1534_v57, %v1538_v17  ;;  %v1543_v49 = vsel %vm764_vm10, %v1538_v17, %v1534_v57 }
 0x1c8   : > { %v1558_v30 = vmul.f32 %v1551_v22, %v1543_v49  ;;  %v1559_v11 = vmul.f32 %v1555_v60, %v1541_v9 }
 0x1c9   : > { %v1564_v26 = vadd.f32 %v1560_v63, %v1531_v8  ;;  %v1565_v50 = vadd.f32 %v1561_v10, %v1532_v29  ;;  %v1612_v21 = vpop.permute.xlu1 %1611 }
 0x1ca   : > { %v1562_v54 = vadd.f32 %v1558_v30, %v1529_v7  ;;  %v1563_v53 = vadd.f32 %v1559_v11, %v1530_v16  ;;  %v1610_v55 = vpop.permute.xlu0 %1609 }
 0x1cb   : > { %v1607_v46 = vadd.f32 %v1598_v12, %v1564_v26  ;;  %v1608_v18 = vadd.f32 %v1600_v25, %v1565_v50 }
 0x1cc   : > { %v1605_v58 = vadd.f32 %v1593_v62, %v1562_v54  ;;  %v1606_v59 = vadd.f32 %v1596_v47, %v1563_v53 }
 0x1cd   : > { %v1616_v19 = vpop.permute.xlu1 %1615 }
 0x1ce   : > { %v1614_v20 = vpop.permute.xlu0 %1613  ;;  %v1618_v44 = vsel %vm819_vm11, %v1612_v21, %v1616_v19  ;;  %v1620_v31 = vsel %vm819_vm11, %v1616_v19, %v1612_v21 }
 0x1cf   : > { %v1617_v24 = vsel %vm819_vm11, %v1610_v55, %v1614_v20  ;;  %v1619_v38 = vsel %vm819_vm11, %v1614_v20, %v1610_v55  ;;  %v1636_v27 = vmul.f32 %v1627_v56, %v1618_v44  ;;  %v1637_v28 = vmul.f32 %v1631_v15, %v1620_v31 }
 0x1d0   : > { %v1634_v52 = vmul.f32 %v1627_v56, %v1617_v24  ;;  %v1635_v42 = vmul.f32 %v1631_v15, %v1619_v38 }
 0x1d1   : > { %v1645_v5 = vpop.permute.xlu1 %1644  ;;  %v1640_v43 = vadd.f32 %v1636_v27, %v1607_v46  ;;  %v1641_v45 = vadd.f32 %v1637_v28, %v1608_v18 }
 0x1d2   : > { %v1643_v32 = vpop.permute.xlu0 %1642  ;;  %v1638_v39 = vadd.f32 %v1634_v52, %v1605_v58  ;;  %v1639_v40 = vadd.f32 %v1635_v42, %v1606_v59 }
 0x1d5   : > { %v1649_v57 = vpop.permute.xlu1 %1648 }
 0x1d6   : > { %v1651_v22 = vsel %vm853_vm12, %v1645_v5, %v1649_v57  ;;  %v1653_v60 = vsel %vm853_vm12, %v1649_v57, %v1645_v5  ;;  %v1647_v61 = vpop.permute.xlu0 %1646 }
 0x1d7   : > { %v1669_v6 = vmul.f32 %v1660_v34, %v1651_v22  ;;  %v1670_v13 = vmul.f32 %v1664_v51, %v1653_v60  ;;  %v1650_v33 = vsel %vm853_vm12, %v1643_v32, %v1647_v61  ;;  %v1652_v35 = vsel %vm853_vm12, %v1647_v61, %v1643_v32 }
 0x1d8   : > { %v1667_v4 = vmul.f32 %v1660_v34, %v1650_v33  ;;  %v1668_v41 = vmul.f32 %v1664_v51, %v1652_v35 }
 0x1d9   : > { %v1673_v12 = vadd.f32 %v1669_v6, %v1640_v43  ;;  %v1674_v25 = vadd.f32 %v1670_v13, %v1641_v45 }
 0x1da   : > { %v1671_v8 = vadd.f32 %v1667_v4, %v1638_v39  ;;  %v1672_v29 = vadd.f32 %v1668_v41, %v1639_v40 }
 0x1db   : > { %v1677_v36 = vmul.f32 %v1673_v12, %v2045_v2  ;;  %v1678_v37 = vmul.f32 %v1674_v25, %v2047_v3 }
 0x1dc   : > { %v1675_v17 = vmul.f32 %v1671_v8, %v2041_v0  ;;  %v1676_v63 = vmul.f32 %v1672_v29, %v2043_v1 }
 0x1dd   : > { %1681 = vst [vmem:[%s2039_s13 + $0x10] sm:$0xff] %v1677_v36  ;;  %1682 = vst [vmem:[%s2039_s13 + $0x18] sm:$0xff] %v1678_v37 }
 0x1de   : > { %1679 = vst [vmem:[%s2039_s13] sm:$0xff] %v1675_v17  ;;  %1680 = vst [vmem:[%s2039_s13 + $0x8] sm:$0xff] %v1676_v63 }
 0x1df PF: > { %s14_s19 = sadd.s32 1, %s1961_s19   ;;  %s2904_s15 = smov %s1953_s17 }
 0x1e0   : > { %p11_p9 = scmp.ge.s32.totalorder %s14_s19, 6   ;;  %s2905_s16 = smov %s1957_s18 }
 0x1e1   : > { %s2906_s17 = smov %s2909_s20  ;;  %s2907_s18 = smov %s2913_s21 }
 0x1e2   :  { %13 = sbr.rel (!%p11_p9) target bundleno = 3 (0x3), region = 111 }

</bundles_post_ra>
